<compile_context>
chip_gen: v6e
topology: v6e:2x2x1
jax: 0.10.0
libtpu: 0.0.40
codegen_flags: <defaults>
</compile_context>

<pallas_src>
import functools

import numpy as np

import jax
import jax.numpy as jnp
from jax import lax
from jax.experimental import pallas as pl
from jax.experimental.pallas import tpu as pltpu


# ---------------------------------------------------------------------------
# Host-side helpers (pure data movement / static tables)
# ---------------------------------------------------------------------------

def _window_partition(x, ws):
    """(B, H, W, C) -> (B * nW, ws, ws, C), matches torch window_partition."""
    B, H, W, C = x.shape
    x = x.reshape(B, H // ws, ws, W // ws, ws, C)
    x = jnp.transpose(x, (0, 1, 3, 2, 4, 5))
    return x.reshape(B * (H // ws) * (W // ws), ws, ws, C)


def _window_reverse(windows, ws, H, W):
    """(B * nW, ws, ws, C) -> (B, H, W, C), matches torch window_reverse."""
    B = windows.shape[0] // ((H // ws) * (W // ws))
    x = windows.reshape(B, H // ws, W // ws, ws, ws, -1)
    x = jnp.transpose(x, (0, 1, 3, 2, 4, 5))
    return x.reshape(B, H, W, -1)


def _relative_position_index(ws):
    """Same construction as the PyTorch module (numpy, static)."""
    coords_h = np.arange(ws)
    coords_w = np.arange(ws)
    coords = np.stack(np.meshgrid(coords_h, coords_w, indexing="ij"))  # (2, ws, ws)
    coords_flat = coords.reshape(2, -1)
    rel = coords_flat[:, :, None] - coords_flat[:, None, :]            # (2, N, N)
    rel = rel.transpose(1, 2, 0).astype(np.int64)
    rel[:, :, 0] += ws - 1
    rel[:, :, 1] += ws - 1
    rel[:, :, 0] *= 2 * ws - 1
    return rel.sum(-1)                                                  # (N, N)


def _make_attn_mask(H, W, ws, shift):
    """Shifted-window attention mask, (nW, N, N), same as torch code."""
    img_mask = np.zeros((1, H, W, 1), np.float32)
    cnt = 0
    for hs in (slice(0, -ws), slice(-ws, -shift), slice(-shift, None)):
        for wsl in (slice(0, -ws), slice(-ws, -shift), slice(-shift, None)):
            img_mask[:, hs, wsl, :] = cnt
            cnt += 1
    m = img_mask.reshape(1, H // ws, ws, W // ws, ws, 1)
    m = m.transpose(0, 1, 3, 2, 4, 5).reshape(-1, ws * ws)              # (nW, N)
    am = m[:, None, :] - m[:, :, None]
    am = np.where(am != 0, -100.0, 0.0).astype(np.float32)
    return jnp.asarray(am)


def _pick_tile(m, cap=512):
    """Largest row tile <= cap that divides m (multiple of 8), else m itself."""
    if m <= cap:
        return m
    for t in (cap, 256, 128, 64, 32, 16, 8):
        if m % t == 0:
            return t
    return m


# ---------------------------------------------------------------------------
# Kernel A: norm1 + windowed multi-head attention + proj (one image per step)
# ---------------------------------------------------------------------------

def _window_attn_kernel(x_ref, bias_ref, g1_ref, b1_ref, wqkv_ref, bqkv_ref,
                        wp_ref, bp_ref, o_ref, *, num_heads, scale, eps):
    nW, N, C = x_ref.shape
    hd = C // num_heads

    x = x_ref[...].astype(jnp.float32)                       # (nW, N, C)

    # norm1 over channels (lane axis -> cheap XLU reduction, no relayout).
    mu = jnp.mean(x, axis=-1, keepdims=True)
    var = jnp.mean((x - mu) ** 2, axis=-1, keepdims=True)
    xn = (x - mu) * lax.rsqrt(var + eps)
    xn = xn * g1_ref[...] + b1_ref[...]                       # (nW, N, C)

    # qkv projection on a tall (nW*N, C) matmul (MXU friendly).
    xn2 = xn.reshape(nW * N, C)
    qkv = jnp.dot(xn2, wqkv_ref[...],
                  preferred_element_type=jnp.float32) + bqkv_ref[...]
    q = qkv[:, 0:C].reshape(nW, N, C) * scale
    k = qkv[:, C:2 * C].reshape(nW, N, C)
    v = qkv[:, 2 * C:3 * C].reshape(nW, N, C)

    bias = bias_ref[...]                                      # (nW, nh, N, N)

    outs = []
    for h in range(num_heads):                                # unrolled, small nh
        qh = q[:, :, h * hd:(h + 1) * hd]                     # (nW, N, hd)
        kh = k[:, :, h * hd:(h + 1) * hd]
        vh = v[:, :, h * hd:(h + 1) * hd]
        s = jnp.einsum("wnd,wmd->wnm", qh, kh,
                       preferred_element_type=jnp.float32)    # (nW, N, N)
        s = s + bias[:, h, :, :]
        s = s - jnp.max(s, axis=-1, keepdims=True)
        p = jnp.exp(s)
        p = p / jnp.sum(p, axis=-1, keepdims=True)
        outs.append(jnp.einsum("wnm,wmd->wnd", p, vh,
                               preferred_element_type=jnp.float32))

    o = jnp.concatenate(outs, axis=-1).reshape(nW * N, C)     # (nW*N, C)
    y = jnp.dot(o, wp_ref[...],
                preferred_element_type=jnp.float32) + bp_ref[...]
    o_ref[...] = y.reshape(nW, N, C).astype(o_ref.dtype)


# ---------------------------------------------------------------------------
# Kernel B: residual + norm2 + MLP (fc1 -> GELU -> fc2) + residual
# ---------------------------------------------------------------------------

def _mlp_block_kernel(x_ref, a_ref, g2_ref, b2_ref, w1_ref, bb1_ref,
                      w2_ref, bb2_ref, o_ref, *, eps):
    h = x_ref[...].astype(jnp.float32) + a_ref[...].astype(jnp.float32)

    mu = jnp.mean(h, axis=-1, keepdims=True)
    var = jnp.mean((h - mu) ** 2, axis=-1, keepdims=True)
    hn = (h - mu) * lax.rsqrt(var + eps) * g2_ref[...] + b2_ref[...]

    u = jnp.dot(hn, w1_ref[...],
                preferred_element_type=jnp.float32) + bb1_ref[...]
    # TODO(synk): PyTorch nn.GELU default is the exact erf form; tanh-approx
    #             GELU is used here (difference ~1e-3, EUP-friendly on TPU).
    u = jax.nn.gelu(u, approximate=True)
    y = jnp.dot(u, w2_ref[...],
                preferred_element_type=jnp.float32) + bb2_ref[...]
    o_ref[...] = (h + y).astype(o_ref.dtype)


# ---------------------------------------------------------------------------
# Wrapper: full SwinTransformerBlock forward
# ---------------------------------------------------------------------------

def swin_transformer_block(
        x, *, input_resolution, num_heads,
        norm1_gamma, norm1_beta, qkv_w, qkv_b, rel_pos_table,
        proj_w, proj_b, norm2_gamma, norm2_beta,
        fc1_w, fc1_b, fc2_w, fc2_b,
        window_size=7, shift_size=0, qk_scale=None, eps=1e-5):
    """x: (B, H*W, C) -> (B, H*W, C). Matches SwinTransformerBlock.forward
    with drop=attn_drop=drop_path=0 (identity) and tanh-approx GELU."""
    H, W = input_resolution
    B, L, C = x.shape
    assert L == H * W, "input feature has wrong size"

    # Same window/shift adjustment as the PyTorch module.
    if min(input_resolution) <= window_size:
        shift_size = 0
        window_size = min(input_resolution)
    ws = window_size
    assert 0 <= shift_size < ws
    assert H % ws == 0 and W % ws == 0
    N = ws * ws
    nW = (H // ws) * (W // ws)
    hd = C // num_heads
    scale = qk_scale if qk_scale is not None else hd ** (-0.5)
    assert rel_pos_table.shape == ((2 * ws - 1) ** 2, num_heads)

    # Static relative-position bias (+ shift mask), combined per window.
    rel_idx = _relative_position_index(ws)                         # (N, N) np
    rpb = rel_pos_table[rel_idx.reshape(-1)]                       # (N*N, nh)
    rpb = rpb.reshape(N, N, num_heads).transpose(2, 0, 1)          # (nh, N, N)
    if shift_size > 0:
        mask = _make_attn_mask(H, W, ws, shift_size)               # (nW, N, N)
    else:
        mask = jnp.zeros((nW, N, N), jnp.float32)
    bias = rpb[None].astype(jnp.float32) + mask[:, None]           # (nW, nh, N, N)

    # Cyclic shift + window partition (same-size data movement, done in XLA;
    # norm1 is fused into the attention kernel).
    xs = x.reshape(B, H, W, C)
    if shift_size > 0:
        xs = jnp.roll(xs, shift=(-shift_size, -shift_size), axis=(1, 2))
    xw = _window_partition(xs, ws).reshape(B * nW, N, C)

    attn_kernel = functools.partial(
        _window_attn_kernel, num_heads=num_heads, scale=scale, eps=eps)

    attn_out = pl.pallas_call(
        attn_kernel,
        out_shape=jax.ShapeDtypeStruct((B * nW, N, C), x.dtype),
        grid_spec=pltpu.PrefetchScalarGridSpec(
            num_scalar_prefetch=0,
            grid=(B,),
            in_specs=[
                pl.BlockSpec((nW, N, C), lambda b: (b, 0, 0)),
                pl.BlockSpec((nW, num_heads, N, N), lambda b: (0, 0, 0, 0)),
                pl.BlockSpec((1, C), lambda b: (0, 0)),
                pl.BlockSpec((1, C), lambda b: (0, 0)),
                pl.BlockSpec((C, 3 * C), lambda b: (0, 0)),
                pl.BlockSpec((1, 3 * C), lambda b: (0, 0)),
                pl.BlockSpec((C, C), lambda b: (0, 0)),
                pl.BlockSpec((1, C), lambda b: (0, 0)),
            ],
            out_specs=pl.BlockSpec((nW, N, C), lambda b: (b, 0, 0)),
        ),
        compiler_params=pltpu.CompilerParams(
            dimension_semantics=("parallel",),
            vmem_limit_bytes=64 * 1024 * 1024),
    )(xw, bias,
      norm1_gamma.reshape(1, C), norm1_beta.reshape(1, C),
      qkv_w, qkv_b.reshape(1, 3 * C),
      proj_w, proj_b.reshape(1, C))

    # Window reverse + un-shift (same-size data movement).
    ar = _window_reverse(attn_out.reshape(B * nW, ws, ws, C), ws, H, W)
    if shift_size > 0:
        ar = jnp.roll(ar, shift=(shift_size, shift_size), axis=(1, 2))
    attn_tokens = ar.reshape(B * L, C)

    # Fused residual + norm2 + MLP + residual over large token tiles.
    M = B * L
    hidden = fc1_w.shape[1]
    tm = _pick_tile(M)

    mlp_kernel = functools.partial(_mlp_block_kernel, eps=eps)

    out = pl.pallas_call(
        mlp_kernel,
        out_shape=jax.ShapeDtypeStruct((M, C), x.dtype),
        grid_spec=pltpu.PrefetchScalarGridSpec(
            num_scalar_prefetch=0,
            grid=(M // tm,),
            in_specs=[
                pl.BlockSpec((tm, C), lambda i: (i, 0)),
                pl.BlockSpec((tm, C), lambda i: (i, 0)),
                pl.BlockSpec((1, C), lambda i: (0, 0)),
                pl.BlockSpec((1, C), lambda i: (0, 0)),
                pl.BlockSpec((C, hidden), lambda i: (0, 0)),
                pl.BlockSpec((1, hidden), lambda i: (0, 0)),
                pl.BlockSpec((hidden, C), lambda i: (0, 0)),
                pl.BlockSpec((1, C), lambda i: (0, 0)),
            ],
            out_specs=pl.BlockSpec((tm, C), lambda i: (i, 0)),
        ),
        compiler_params=pltpu.CompilerParams(
            dimension_semantics=("parallel",),
            vmem_limit_bytes=64 * 1024 * 1024),
    )(x.reshape(M, C), attn_tokens,
      norm2_gamma.reshape(1, C), norm2_beta.reshape(1, C),
      fc1_w, fc1_b.reshape(1, hidden),
      fc2_w, fc2_b.reshape(1, C))

    return out.reshape(B, L, C)


# ---------------------------------------------------------------------------
# Pure-JAX reference (same math, no Pallas) for verification
# ---------------------------------------------------------------------------

def _reference(x, *, input_resolution, num_heads,
               norm1_gamma, norm1_beta, qkv_w, qkv_b, rel_pos_table,
               proj_w, proj_b, norm2_gamma, norm2_beta,
               fc1_w, fc1_b, fc2_w, fc2_b,
               window_size=7, shift_size=0, qk_scale=None, eps=1e-5):
    with jax.default_matmul_precision("highest"):
        H, W = input_resolution
        B, L, C = x.shape
        if min(input_resolution) <= window_size:
            shift_size = 0
            window_size = min(input_resolution)
        ws = window_size
        N = ws * ws
        nW = (H // ws) * (W // ws)
        nh = num_heads
        hd = C // nh
        scale = qk_scale if qk_scale is not None else hd ** (-0.5)

        def ln(v, g, b):
            mu = jnp.mean(v, -1, keepdims=True)
            var = jnp.mean((v - mu) ** 2, -1, keepdims=True)
            return (v - mu) / jnp.sqrt(var + eps) * g + b

        shortcut = x
        xn = ln(x, norm1_gamma, norm1_beta).reshape(B, H, W, C)
        if shift_size > 0:
            xn = jnp.roll(xn, shift=(-shift_size, -shift_size), axis=(1, 2))
        xw = _window_partition(xn, ws).reshape(-1, N, C)           # (B*nW, N, C)

        qkv = xw @ qkv_w + qkv_b
        qkv = qkv.reshape(-1, N, 3, nh, hd).transpose(2, 0, 3, 1, 4)
        q, k, v = qkv[0] * scale, qkv[1], qkv[2]                   # (B*nW, nh, N, hd)
        attn = jnp.einsum("bhnd,bhmd->bhnm", q, k)

        rel_idx = _relative_position_index(ws)
        rpb = rel_pos_table[rel_idx.reshape(-1)].reshape(N, N, nh).transpose(2, 0, 1)
        attn = attn + rpb[None]
        if shift_size > 0:
            mask = _make_attn_mask(H, W, ws, shift_size)           # (nW, N, N)
            attn = attn.reshape(B, nW, nh, N, N) + mask[None, :, None]
            attn = attn.reshape(-1, nh, N, N)
        attn = jax.nn.softmax(attn, axis=-1)

        out = jnp.einsum("bhnm,bhmd->bhnd", attn, v)
        out = out.transpose(0, 2, 1, 3).reshape(-1, N, C)
        out = out @ proj_w + proj_b

        out = _window_reverse(out.reshape(-1, ws, ws, C), ws, H, W)
        if shift_size > 0:
            out = jnp.roll(out, shift=(shift_size, shift_size), axis=(1, 2))
        h = shortcut + out.reshape(B, L, C)

        y = ln(h, norm2_gamma, norm2_beta)
        y = jax.nn.gelu(y @ fc1_w + fc1_b, approximate=True)
        y = y @ fc2_w + fc2_b
        return h + y


# ---------------------------------------------------------------------------
# Self-test
# ---------------------------------------------------------------------------

if __name__ == "__main__":
    key = jax.random.PRNGKey(0)
    keys = jax.random.split(key, 16)

    B = 2
    H = W = 8
    dim = 32
    num_heads = 4
    window_size = 4
    shift_size = 2          # exercises the shifted-window (masked) path
    mlp_ratio = 4.0
    hidden = int(dim * mlp_ratio)
    input_resolution = (H, W)

    def nrm(k, shape, s=0.1):
        return s * jax.random.normal(k, shape, dtype=jnp.float32)

    x = jax.random.normal(keys[0], (B, H * W, dim), dtype=jnp.float32)

    # nn.Linear weights stored pre-transposed: y = x @ W + b.
    params = dict(
        norm1_gamma=1.0 + nrm(keys[1], (dim,)),
        norm1_beta=nrm(keys[2], (dim,)),
        qkv_w=nrm(keys[3], (dim, 3 * dim)),
        qkv_b=nrm(keys[4], (3 * dim,)),
        rel_pos_table=nrm(keys[5], ((2 * window_size - 1) ** 2, num_heads), 0.02),
        proj_w=nrm(keys[6], (dim, dim)),
        proj_b=nrm(keys[7], (dim,)),
        norm2_gamma=1.0 + nrm(keys[8], (dim,)),
        norm2_beta=nrm(keys[9], (dim,)),
        fc1_w=nrm(keys[10], (dim, hidden)),
        fc1_b=nrm(keys[11], (hidden,)),
        fc2_w=nrm(keys[12], (hidden, dim)),
        fc2_b=nrm(keys[13], (dim,)),
    )

    out = swin_transformer_block(
        x, input_resolution=input_resolution, num_heads=num_heads,
        window_size=window_size, shift_size=shift_size, **params)
    out = jax.block_until_ready(out)
    assert out.shape == (B, H * W, dim), out.shape

    ref = _reference(
        x, input_resolution=input_resolution, num_heads=num_heads,
        window_size=window_size, shift_size=shift_size, **params)
    ref = jax.block_until_ready(ref)

    max_err = float(jnp.max(jnp.abs(out - ref)))
    assert jnp.allclose(out, ref, atol=2e-3, rtol=2e-3), max_err

    print("KERNEL_OK")
</pallas_src>

<mosaic_0001>
module attributes {stable_mosaic.version = 11 : i64} {
  func.func @_window_attn_kernel(%arg0: i32, %arg1: memref<4x16x32xf32, #tpu.memory_space<vmem>>, %arg2: memref<4x4x16x16xf32, #tpu.memory_space<vmem>>, %arg3: memref<1x32xf32, #tpu.memory_space<vmem>>, %arg4: memref<1x32xf32, #tpu.memory_space<vmem>>, %arg5: memref<32x96xf32, #tpu.memory_space<vmem>>, %arg6: memref<1x96xf32, #tpu.memory_space<vmem>>, %arg7: memref<32x32xf32, #tpu.memory_space<vmem>>, %arg8: memref<1x32xf32, #tpu.memory_space<vmem>>, %arg9: memref<4x16x32xf32, #tpu.memory_space<vmem>>) attributes {dimension_semantics = [#tpu.dimension_semantics<parallel>], iteration_bounds = array<i64: 2>, scalar_prefetch = 0 : i64, scratch_operands = 0 : i64, tpu.core_type = #tpu.core_type<tc>, window_params = [{transform_indices = @transform_0, window_bounds = array<i64: 4, 16, 32>}, {pipeline_mode = #tpu.pipeline_mode<synchronous>, transform_indices = @transform_1, window_bounds = array<i64: 4, 4, 16, 16>}, {pipeline_mode = #tpu.pipeline_mode<synchronous>, transform_indices = @transform_2, window_bounds = array<i64: 1, 32>}, {pipeline_mode = #tpu.pipeline_mode<synchronous>, transform_indices = @transform_3, window_bounds = array<i64: 1, 32>}, {pipeline_mode = #tpu.pipeline_mode<synchronous>, transform_indices = @transform_4, window_bounds = array<i64: 32, 96>}, {pipeline_mode = #tpu.pipeline_mode<synchronous>, transform_indices = @transform_5, window_bounds = array<i64: 1, 96>}, {pipeline_mode = #tpu.pipeline_mode<synchronous>, transform_indices = @transform_6, window_bounds = array<i64: 32, 32>}, {pipeline_mode = #tpu.pipeline_mode<synchronous>, transform_indices = @transform_7, window_bounds = array<i64: 1, 32>}, {transform_indices = @transform_8, window_bounds = array<i64: 4, 16, 32>}]} {
    %c0 = arith.constant 0 : index
    %c0_0 = arith.constant 0 : index
    %c0_1 = arith.constant 0 : index
    %0 = vector.load %arg1[%c0, %c0_0, %c0_1] : memref<4x16x32xf32, #tpu.memory_space<vmem>>, vector<4x16x32xf32>
    %cst = arith.constant dense<0.000000e+00> : vector<4x16xf32>
    %1 = vector.multi_reduction <add>, %0, %cst [2] : vector<4x16x32xf32> to vector<4x16xf32>
    %2 = vector.shape_cast %1 : vector<4x16xf32> to vector<4x16x1xf32>
    %cst_2 = arith.constant 3.200000e+01 : f32
    %3 = vector.broadcast %cst_2 : f32 to vector<4x16x1xf32>
    %4 = arith.divf %2, %3 : vector<4x16x1xf32>
    %5 = vector.broadcast %4 : vector<4x16x1xf32> to vector<4x16x32xf32>
    %6 = arith.subf %0, %5 : vector<4x16x32xf32>
    %7 = arith.mulf %6, %6 : vector<4x16x32xf32>
    %cst_3 = arith.constant dense<0.000000e+00> : vector<4x16xf32>
    %8 = vector.multi_reduction <add>, %7, %cst_3 [2] : vector<4x16x32xf32> to vector<4x16xf32>
    %9 = vector.shape_cast %8 : vector<4x16xf32> to vector<4x16x1xf32>
    %cst_4 = arith.constant 3.200000e+01 : f32
    %10 = vector.broadcast %cst_4 : f32 to vector<4x16x1xf32>
    %11 = arith.divf %9, %10 : vector<4x16x1xf32>
    %12 = vector.broadcast %4 : vector<4x16x1xf32> to vector<4x16x32xf32>
    %13 = arith.subf %0, %12 : vector<4x16x32xf32>
    %cst_5 = arith.constant 9.99999974E-6 : f32
    %14 = vector.broadcast %cst_5 : f32 to vector<4x16x1xf32>
    %15 = arith.addf %11, %14 : vector<4x16x1xf32>
    %16 = math.rsqrt %15 : vector<4x16x1xf32>
    %17 = vector.broadcast %16 : vector<4x16x1xf32> to vector<4x16x32xf32>
    %18 = arith.mulf %13, %17 : vector<4x16x32xf32>
    %c0_6 = arith.constant 0 : index
    %c0_7 = arith.constant 0 : index
    %19 = vector.load %arg3[%c0_6, %c0_7] : memref<1x32xf32, #tpu.memory_space<vmem>>, vector<1x32xf32>
    %20 = vector.shape_cast %19 : vector<1x32xf32> to vector<1x1x32xf32>
    %21 = vector.broadcast %20 : vector<1x1x32xf32> to vector<4x16x32xf32>
    %22 = arith.mulf %18, %21 : vector<4x16x32xf32>
    %c0_8 = arith.constant 0 : index
    %c0_9 = arith.constant 0 : index
    %23 = vector.load %arg4[%c0_8, %c0_9] : memref<1x32xf32, #tpu.memory_space<vmem>>, vector<1x32xf32>
    %24 = vector.shape_cast %23 : vector<1x32xf32> to vector<1x1x32xf32>
    %25 = vector.broadcast %24 : vector<1x1x32xf32> to vector<4x16x32xf32>
    %26 = arith.addf %22, %25 : vector<4x16x32xf32>
    %27 = vector.shape_cast %26 : vector<4x16x32xf32> to vector<64x32xf32>
    %c0_10 = arith.constant 0 : index
    %c0_11 = arith.constant 0 : index
    %28 = vector.load %arg5[%c0_10, %c0_11] : memref<32x96xf32, #tpu.memory_space<vmem>>, vector<32x96xf32>
    %cst_12 = arith.constant dense<0.000000e+00> : vector<64x96xf32>
    %29 = tpu.matmul %27, %28, %cst_12 {dimension_numbers = #tpu.dot_dimension_numbers<[1], [0], [0], [1], [0, 0, 1, 1], [], []>} : vector<64x32xf32>, vector<32x96xf32>, vector<64x96xf32> -> vector<64x96xf32>
    %c0_13 = arith.constant 0 : index
    %c0_14 = arith.constant 0 : index
    %30 = vector.load %arg6[%c0_13, %c0_14] : memref<1x96xf32, #tpu.memory_space<vmem>>, vector<1x96xf32>
    %31 = vector.broadcast %30 : vector<1x96xf32> to vector<64x96xf32>
    %32 = arith.addf %29, %31 : vector<64x96xf32>
    %33 = vector.extract_strided_slice %32 {offsets = [0, 0], sizes = [64, 32], strides = [1, 1]} : vector<64x96xf32> to vector<64x32xf32>
    %34 = vector.shape_cast %33 : vector<64x32xf32> to vector<4x16x32xf32>
    %cst_15 = arith.constant 0.353553385 : f32
    %35 = vector.broadcast %cst_15 : f32 to vector<4x16x32xf32>
    %36 = arith.mulf %34, %35 : vector<4x16x32xf32>
    %37 = vector.extract_strided_slice %32 {offsets = [0, 32], sizes = [64, 32], strides = [1, 1]} : vector<64x96xf32> to vector<64x32xf32>
    %38 = vector.shape_cast %37 : vector<64x32xf32> to vector<4x16x32xf32>
    %39 = vector.extract_strided_slice %32 {offsets = [0, 64], sizes = [64, 32], strides = [1, 1]} : vector<64x96xf32> to vector<64x32xf32>
    %40 = vector.shape_cast %39 : vector<64x32xf32> to vector<4x16x32xf32>
    %c0_16 = arith.constant 0 : index
    %c0_17 = arith.constant 0 : index
    %c0_18 = arith.constant 0 : index
    %c0_19 = arith.constant 0 : index
    %41 = vector.load %arg2[%c0_16, %c0_17, %c0_18, %c0_19] : memref<4x4x16x16xf32, #tpu.memory_space<vmem>>, vector<4x4x16x16xf32>
    %42 = vector.extract_strided_slice %36 {offsets = [0, 0, 0], sizes = [4, 16, 8], strides = [1, 1, 1]} : vector<4x16x32xf32> to vector<4x16x8xf32>
    %43 = vector.extract_strided_slice %38 {offsets = [0, 0, 0], sizes = [4, 16, 8], strides = [1, 1, 1]} : vector<4x16x32xf32> to vector<4x16x8xf32>
    %44 = vector.extract_strided_slice %40 {offsets = [0, 0, 0], sizes = [4, 16, 8], strides = [1, 1, 1]} : vector<4x16x32xf32> to vector<4x16x8xf32>
    "tpu.trace_start"() <{level = 10 : i32, message = "wnd,wmd->wnm"}> : () -> ()
    %cst_20 = arith.constant dense<0.000000e+00> : vector<4x16x16xf32>
    %45 = tpu.matmul %42, %43, %cst_20 {dimension_numbers = #tpu.dot_dimension_numbers<[2], [2], [1], [1], [0, 0, 0, 1, 1, 1], [0], [0]>} : vector<4x16x8xf32>, vector<4x16x8xf32>, vector<4x16x16xf32> -> vector<4x16x16xf32>
    "tpu.trace_stop"() : () -> ()
    %46 = vector.extract_strided_slice %41 {offsets = [0, 0, 0, 0], sizes = [4, 1, 16, 16], strides = [1, 1, 1, 1]} : vector<4x4x16x16xf32> to vector<4x1x16x16xf32>
    %47 = vector.shape_cast %46 : vector<4x1x16x16xf32> to vector<4x16x16xf32>
    %48 = arith.addf %45, %47 : vector<4x16x16xf32>
    %cst_21 = arith.constant dense<0xFF800000> : vector<4x16xf32>
    %49 = vector.multi_reduction <maximumf>, %48, %cst_21 [2] : vector<4x16x16xf32> to vector<4x16xf32>
    %50 = vector.shape_cast %49 : vector<4x16xf32> to vector<4x16x1xf32>
    %51 = vector.broadcast %50 : vector<4x16x1xf32> to vector<4x16x16xf32>
    %52 = arith.subf %48, %51 : vector<4x16x16xf32>
    %53 = math.exp %52 : vector<4x16x16xf32>
    %cst_22 = arith.constant dense<0.000000e+00> : vector<4x16xf32>
    %54 = vector.multi_reduction <add>, %53, %cst_22 [2] : vector<4x16x16xf32> to vector<4x16xf32>
    %55 = vector.shape_cast %54 : vector<4x16xf32> to vector<4x16x1xf32>
    %56 = vector.broadcast %55 : vector<4x16x1xf32> to vector<4x16x16xf32>
    %57 = arith.divf %53, %56 : vector<4x16x16xf32>
    "tpu.trace_start"() <{level = 10 : i32, message = "wnm,wmd->wnd"}> : () -> ()
    %cst_23 = arith.constant dense<0.000000e+00> : vector<4x16x8xf32>
    %58 = tpu.matmul %57, %44, %cst_23 {dimension_numbers = #tpu.dot_dimension_numbers<[2], [1], [1], [2], [0, 0, 0, 1, 1, 2], [0], [0]>} : vector<4x16x16xf32>, vector<4x16x8xf32>, vector<4x16x8xf32> -> vector<4x16x8xf32>
    "tpu.trace_stop"() : () -> ()
    %59 = vector.extract_strided_slice %36 {offsets = [0, 0, 8], sizes = [4, 16, 8], strides = [1, 1, 1]} : vector<4x16x32xf32> to vector<4x16x8xf32>
    %60 = vector.extract_strided_slice %38 {offsets = [0, 0, 8], sizes = [4, 16, 8], strides = [1, 1, 1]} : vector<4x16x32xf32> to vector<4x16x8xf32>
    %61 = vector.extract_strided_slice %40 {offsets = [0, 0, 8], sizes = [4, 16, 8], strides = [1, 1, 1]} : vector<4x16x32xf32> to vector<4x16x8xf32>
    "tpu.trace_start"() <{level = 10 : i32, message = "wnd,wmd->wnm"}> : () -> ()
    %cst_24 = arith.constant dense<0.000000e+00> : vector<4x16x16xf32>
    %62 = tpu.matmul %59, %60, %cst_24 {dimension_numbers = #tpu.dot_dimension_numbers<[2], [2], [1], [1], [0, 0, 0, 1, 1, 1], [0], [0]>} : vector<4x16x8xf32>, vector<4x16x8xf32>, vector<4x16x16xf32> -> vector<4x16x16xf32>
    "tpu.trace_stop"() : () -> ()
    %63 = vector.extract_strided_slice %41 {offsets = [0, 1, 0, 0], sizes = [4, 1, 16, 16], strides = [1, 1, 1, 1]} : vector<4x4x16x16xf32> to vector<4x1x16x16xf32>
    %64 = vector.shape_cast %63 : vector<4x1x16x16xf32> to vector<4x16x16xf32>
    %65 = arith.addf %62, %64 : vector<4x16x16xf32>
    %cst_25 = arith.constant dense<0xFF800000> : vector<4x16xf32>
    %66 = vector.multi_reduction <maximumf>, %65, %cst_25 [2] : vector<4x16x16xf32> to vector<4x16xf32>
    %67 = vector.shape_cast %66 : vector<4x16xf32> to vector<4x16x1xf32>
    %68 = vector.broadcast %67 : vector<4x16x1xf32> to vector<4x16x16xf32>
    %69 = arith.subf %65, %68 : vector<4x16x16xf32>
    %70 = math.exp %69 : vector<4x16x16xf32>
    %cst_26 = arith.constant dense<0.000000e+00> : vector<4x16xf32>
    %71 = vector.multi_reduction <add>, %70, %cst_26 [2] : vector<4x16x16xf32> to vector<4x16xf32>
    %72 = vector.shape_cast %71 : vector<4x16xf32> to vector<4x16x1xf32>
    %73 = vector.broadcast %72 : vector<4x16x1xf32> to vector<4x16x16xf32>
    %74 = arith.divf %70, %73 : vector<4x16x16xf32>
    "tpu.trace_start"() <{level = 10 : i32, message = "wnm,wmd->wnd"}> : () -> ()
    %cst_27 = arith.constant dense<0.000000e+00> : vector<4x16x8xf32>
    %75 = tpu.matmul %74, %61, %cst_27 {dimension_numbers = #tpu.dot_dimension_numbers<[2], [1], [1], [2], [0, 0, 0, 1, 1, 2], [0], [0]>} : vector<4x16x16xf32>, vector<4x16x8xf32>, vector<4x16x8xf32> -> vector<4x16x8xf32>
    "tpu.trace_stop"() : () -> ()
    %76 = vector.extract_strided_slice %36 {offsets = [0, 0, 16], sizes = [4, 16, 8], strides = [1, 1, 1]} : vector<4x16x32xf32> to vector<4x16x8xf32>
    %77 = vector.extract_strided_slice %38 {offsets = [0, 0, 16], sizes = [4, 16, 8], strides = [1, 1, 1]} : vector<4x16x32xf32> to vector<4x16x8xf32>
    %78 = vector.extract_strided_slice %40 {offsets = [0, 0, 16], sizes = [4, 16, 8], strides = [1, 1, 1]} : vector<4x16x32xf32> to vector<4x16x8xf32>
    "tpu.trace_start"() <{level = 10 : i32, message = "wnd,wmd->wnm"}> : () -> ()
    %cst_28 = arith.constant dense<0.000000e+00> : vector<4x16x16xf32>
    %79 = tpu.matmul %76, %77, %cst_28 {dimension_numbers = #tpu.dot_dimension_numbers<[2], [2], [1], [1], [0, 0, 0, 1, 1, 1], [0], [0]>} : vector<4x16x8xf32>, vector<4x16x8xf32>, vector<4x16x16xf32> -> vector<4x16x16xf32>
    "tpu.trace_stop"() : () -> ()
    %80 = vector.extract_strided_slice %41 {offsets = [0, 2, 0, 0], sizes = [4, 1, 16, 16], strides = [1, 1, 1, 1]} : vector<4x4x16x16xf32> to vector<4x1x16x16xf32>
    %81 = vector.shape_cast %80 : vector<4x1x16x16xf32> to vector<4x16x16xf32>
    %82 = arith.addf %79, %81 : vector<4x16x16xf32>
    %cst_29 = arith.constant dense<0xFF800000> : vector<4x16xf32>
    %83 = vector.multi_reduction <maximumf>, %82, %cst_29 [2] : vector<4x16x16xf32> to vector<4x16xf32>
    %84 = vector.shape_cast %83 : vector<4x16xf32> to vector<4x16x1xf32>
    %85 = vector.broadcast %84 : vector<4x16x1xf32> to vector<4x16x16xf32>
    %86 = arith.subf %82, %85 : vector<4x16x16xf32>
    %87 = math.exp %86 : vector<4x16x16xf32>
    %cst_30 = arith.constant dense<0.000000e+00> : vector<4x16xf32>
    %88 = vector.multi_reduction <add>, %87, %cst_30 [2] : vector<4x16x16xf32> to vector<4x16xf32>
    %89 = vector.shape_cast %88 : vector<4x16xf32> to vector<4x16x1xf32>
    %90 = vector.broadcast %89 : vector<4x16x1xf32> to vector<4x16x16xf32>
    %91 = arith.divf %87, %90 : vector<4x16x16xf32>
    "tpu.trace_start"() <{level = 10 : i32, message = "wnm,wmd->wnd"}> : () -> ()
    %cst_31 = arith.constant dense<0.000000e+00> : vector<4x16x8xf32>
    %92 = tpu.matmul %91, %78, %cst_31 {dimension_numbers = #tpu.dot_dimension_numbers<[2], [1], [1], [2], [0, 0, 0, 1, 1, 2], [0], [0]>} : vector<4x16x16xf32>, vector<4x16x8xf32>, vector<4x16x8xf32> -> vector<4x16x8xf32>
    "tpu.trace_stop"() : () -> ()
    %93 = vector.extract_strided_slice %36 {offsets = [0, 0, 24], sizes = [4, 16, 8], strides = [1, 1, 1]} : vector<4x16x32xf32> to vector<4x16x8xf32>
    %94 = vector.extract_strided_slice %38 {offsets = [0, 0, 24], sizes = [4, 16, 8], strides = [1, 1, 1]} : vector<4x16x32xf32> to vector<4x16x8xf32>
    %95 = vector.extract_strided_slice %40 {offsets = [0, 0, 24], sizes = [4, 16, 8], strides = [1, 1, 1]} : vector<4x16x32xf32> to vector<4x16x8xf32>
    "tpu.trace_start"() <{level = 10 : i32, message = "wnd,wmd->wnm"}> : () -> ()
    %cst_32 = arith.constant dense<0.000000e+00> : vector<4x16x16xf32>
    %96 = tpu.matmul %93, %94, %cst_32 {dimension_numbers = #tpu.dot_dimension_numbers<[2], [2], [1], [1], [0, 0, 0, 1, 1, 1], [0], [0]>} : vector<4x16x8xf32>, vector<4x16x8xf32>, vector<4x16x16xf32> -> vector<4x16x16xf32>
    "tpu.trace_stop"() : () -> ()
    %97 = vector.extract_strided_slice %41 {offsets = [0, 3, 0, 0], sizes = [4, 1, 16, 16], strides = [1, 1, 1, 1]} : vector<4x4x16x16xf32> to vector<4x1x16x16xf32>
    %98 = vector.shape_cast %97 : vector<4x1x16x16xf32> to vector<4x16x16xf32>
    %99 = arith.addf %96, %98 : vector<4x16x16xf32>
    %cst_33 = arith.constant dense<0xFF800000> : vector<4x16xf32>
    %100 = vector.multi_reduction <maximumf>, %99, %cst_33 [2] : vector<4x16x16xf32> to vector<4x16xf32>
    %101 = vector.shape_cast %100 : vector<4x16xf32> to vector<4x16x1xf32>
    %102 = vector.broadcast %101 : vector<4x16x1xf32> to vector<4x16x16xf32>
    %103 = arith.subf %99, %102 : vector<4x16x16xf32>
    %104 = math.exp %103 : vector<4x16x16xf32>
    %cst_34 = arith.constant dense<0.000000e+00> : vector<4x16xf32>
    %105 = vector.multi_reduction <add>, %104, %cst_34 [2] : vector<4x16x16xf32> to vector<4x16xf32>
    %106 = vector.shape_cast %105 : vector<4x16xf32> to vector<4x16x1xf32>
    %107 = vector.broadcast %106 : vector<4x16x1xf32> to vector<4x16x16xf32>
    %108 = arith.divf %104, %107 : vector<4x16x16xf32>
    "tpu.trace_start"() <{level = 10 : i32, message = "wnm,wmd->wnd"}> : () -> ()
    %cst_35 = arith.constant dense<0.000000e+00> : vector<4x16x8xf32>
    %109 = tpu.matmul %108, %95, %cst_35 {dimension_numbers = #tpu.dot_dimension_numbers<[2], [1], [1], [2], [0, 0, 0, 1, 1, 2], [0], [0]>} : vector<4x16x16xf32>, vector<4x16x8xf32>, vector<4x16x8xf32> -> vector<4x16x8xf32>
    "tpu.trace_stop"() : () -> ()
    %110 = tpu.concatenate %58, %75, %92, %109 in 2 : vector<4x16x8xf32>, vector<4x16x8xf32>, vector<4x16x8xf32>, vector<4x16x8xf32> -> vector<4x16x32xf32>
    %111 = vector.shape_cast %110 : vector<4x16x32xf32> to vector<64x32xf32>
    %c0_36 = arith.constant 0 : index
    %c0_37 = arith.constant 0 : index
    %112 = vector.load %arg7[%c0_36, %c0_37] : memref<32x32xf32, #tpu.memory_space<vmem>>, vector<32x32xf32>
    %cst_38 = arith.constant dense<0.000000e+00> : vector<64x32xf32>
    %113 = tpu.matmul %111, %112, %cst_38 {dimension_numbers = #tpu.dot_dimension_numbers<[1], [0], [0], [1], [0, 0, 1, 1], [], []>} : vector<64x32xf32>, vector<32x32xf32>, vector<64x32xf32> -> vector<64x32xf32>
    %c0_39 = arith.constant 0 : index
    %c0_40 = arith.constant 0 : index
    %114 = vector.load %arg8[%c0_39, %c0_40] : memref<1x32xf32, #tpu.memory_space<vmem>>, vector<1x32xf32>
    %115 = vector.broadcast %114 : vector<1x32xf32> to vector<64x32xf32>
    %116 = arith.addf %113, %115 : vector<64x32xf32>
    %117 = vector.shape_cast %116 : vector<64x32xf32> to vector<4x16x32xf32>
    %c0_41 = arith.constant 0 : index
    %c0_42 = arith.constant 0 : index
    %c0_43 = arith.constant 0 : index
    %118 = vector.load %arg9[%c0_41, %c0_42, %c0_43] : memref<4x16x32xf32, #tpu.memory_space<vmem>>, vector<4x16x32xf32>
    tpu.vector_store %arg9[%c0_41, %c0_42, %c0_43], %117 {strides = array<i32>} : memref<4x16x32xf32, #tpu.memory_space<vmem>>, vector<4x16x32xf32>,
    return
  }
  func.func @transform_0(%arg0: i32) -> (i32, i32, i32) {
    %c0_i32 = arith.constant 0 : i32
    %c0_i32_0 = arith.constant 0 : i32
    %c0_i32_1 = arith.constant 0 : i32
    return %arg0, %c0_i32, %c0_i32_0 : i32, i32, i32
  }
  func.func @transform_1(%arg0: i32) -> (i32, i32, i32, i32) {
    %c0_i32 = arith.constant 0 : i32
    %c0_i32_0 = arith.constant 0 : i32
    %c0_i32_1 = arith.constant 0 : i32
    %c0_i32_2 = arith.constant 0 : i32
    %c0_i32_3 = arith.constant 0 : i32
    return %c0_i32, %c0_i32_0, %c0_i32_1, %c0_i32_2 : i32, i32, i32, i32
  }
  func.func @transform_2(%arg0: i32) -> (i32, i32) {
    %c0_i32 = arith.constant 0 : i32
    %c0_i32_0 = arith.constant 0 : i32
    %c0_i32_1 = arith.constant 0 : i32
    return %c0_i32, %c0_i32_0 : i32, i32
  }
  func.func @transform_3(%arg0: i32) -> (i32, i32) {
    %c0_i32 = arith.constant 0 : i32
    %c0_i32_0 = arith.constant 0 : i32
    %c0_i32_1 = arith.constant 0 : i32
    return %c0_i32, %c0_i32_0 : i32, i32
  }
  func.func @transform_4(%arg0: i32) -> (i32, i32) {
    %c0_i32 = arith.constant 0 : i32
    %c0_i32_0 = arith.constant 0 : i32
    %c0_i32_1 = arith.constant 0 : i32
    return %c0_i32, %c0_i32_0 : i32, i32
  }
  func.func @transform_5(%arg0: i32) -> (i32, i32) {
    %c0_i32 = arith.constant 0 : i32
    %c0_i32_0 = arith.constant 0 : i32
    %c0_i32_1 = arith.constant 0 : i32
    return %c0_i32, %c0_i32_0 : i32, i32
  }
  func.func @transform_6(%arg0: i32) -> (i32, i32) {
    %c0_i32 = arith.constant 0 : i32
    %c0_i32_0 = arith.constant 0 : i32
    %c0_i32_1 = arith.constant 0 : i32
    return %c0_i32, %c0_i32_0 : i32, i32
  }
  func.func @transform_7(%arg0: i32) -> (i32, i32) {
    %c0_i32 = arith.constant 0 : i32
    %c0_i32_0 = arith.constant 0 : i32
    %c0_i32_1 = arith.constant 0 : i32
    return %c0_i32, %c0_i32_0 : i32, i32
  }
  func.func @transform_8(%arg0: i32) -> (i32, i32, i32) {
    %c0_i32 = arith.constant 0 : i32
    %c0_i32_0 = arith.constant 0 : i32
    %c0_i32_1 = arith.constant 0 : i32
    return %arg0, %c0_i32, %c0_i32_0 : i32, i32, i32
  }
}

</mosaic_0001>

<bundles_post_ra>
// kernel: tpu_custom_call.1
= control target key start
LH: loop header
LB: loop body
LE: loop exit
PB: predicated region body
PF: predicated region fallthrough
CT: control target
= control target key end

     0   :  { %s6320_s0 = inlined_call_operand.hbm [shape: f32[8,16,32], index: 0, kind: input, shape index: {}]   ;;  %s6321_s1 = inlined_call_operand.hbm [shape: f32[4,4,16,16], index: 1, kind: input, shape index: {}]   ;;  %s6322_s2 = inlined_call_operand.vmem [shape: f32[1,32], index: 2, kind: input, shape index: {}]   ;;  %s6323_s3 = inlined_call_operand.vmem [shape: f32[1,32], index: 3, kind: input, shape index: {}]   ;;  %s6324_s4 = inlined_call_operand.hbm [shape: f32[32,96], index: 4, kind: input, shape index: {}]   ;;  %s6325_s5 = inlined_call_operand.vmem [shape: f32[1,96], index: 5, kind: input, shape index: {}]   ;;  %s6326_s6 = inlined_call_operand.hbm [shape: f32[32,32], index: 6, kind: input, shape index: {}]   ;;  %s6327_s7 = inlined_call_operand.vmem [shape: f32[1,32], index: 7, kind: input, shape index: {}]   ;;  %s6328_s8 = inlined_call_operand.hbm [shape: f32[8,16,32], index: 8, kind: output, shape index: {}]  }
   0x1   :  { %6335 = sst [smem:[#allocation15_spill]] %s6321_s1 }
   0x2   :  { %6336 = sst [smem:[#allocation16_spill]] %s6324_s4 }
   0x3   :  { %13 = vsyncpa [#allocation3], 0 }
   0x4   :  { %15 = vsyncpa [#allocation3 + $0x1], 0 }
   0x5   :  { %16 = vsyncpa [#allocation6], 0 }
   0x6   :  { %17 = vsyncpa [#allocation9], 0 }
   0x7   :  { %18 = vsyncpa [#allocation4], 0 }
   0x8   :  { %20 = vsyncpa [#allocation4 + $0x1], 0  ;;  %s5334_s27 = smov 0   ;;  %s5336_s28 = smov 0  }
   0x9   :  { %s5338_s29 = smov 0   ;;  %s5340_s30 = smov 0  }
   0xa LB: > { %s5355_s9 = sadd.s32 4294967295, %s5265_s30   ;;  %s4283_s10 = sadd.s32 4294967294, %s5265_s30   ;;  %s5265_s30 = sphi %s5340_s30, %s6359_s30   ;;  %s5261_s29 = sphi %s5338_s29, %s6358_s29   ;;  %s5257_s28 = sphi %s5336_s28, %s6357_s28   ;;  %s5253_s27 = sphi %s5334_s27, %s6356_s27  }
   0xb   : > { %p46_p0 = scmp.ne.s32.totalorder %s5257_s28, %s5253_s27  ;;  %p6329_p1 = scmp.eq.s32.totalorder %s5355_s9, 0 }
   0xc   : > { %p217_p2 = scmp.eq.s32.totalorder %s5355_s9, 1  ;;  %p223_p3 = scmp.eq.s32.totalorder %s4283_s10, 1 }
   0xd   : > { %p5364_p4 = por %p6329_p1, %p46_p0  ;;  %p4284_p5 = scmp.ge.s32.totalorder %s5265_s30, 1 }
   0xe   : > { %p5369_p6 = por %p223_p3, %p46_p0  ;;  %p230_p7 = scmp.lt.s32.totalorder %s5265_s30, 3 }
   0xf   : > { %s6337_s11 = scalar_select %p5364_p4, 1, 0 }
  0x10   : > { %s6338_s12 = scalar_select %p5369_p6, 1, 0 }
  0x11   : > { %p5374_p8 = pnand %p4284_p5, %p230_p7  ;;  %s5267_s14 = smov [#allocation5]  }
  0x12   : > { %s242_s15 = sshll.u32 %s5267_s14, 4  ;;  %s5268_s17 = smov [#allocation7]   ;;  %s243_s15 = int_to_ptr.vmem [resolvable:$true] %s242_s15 }
  0x13   : > { %s6339_s13 = scalar_select %p5374_p8, 1, 0 }
  0x14   : > { %p4865_p9 = pneg %p5374_p8  ;;  %s261_s18 = sshll.u32 %s5268_s17, 4  ;;  %s262_s18 = int_to_ptr.vmem [resolvable:$true] %s261_s18 }
  0x15   : > { %s5269_s19 = smov [#allocation8]   ;;  %s5098_s21 = scalar_lea.vmem %s243_s15, 4096 }
  0x16   : > { %p5383_p11 = pnand %p4865_p9, %p6329_p1  ;;  %s277_s20 = sshll.u32 %s5269_s19, 4  ;;  %s278_s20 = int_to_ptr.vmem [resolvable:$true] %s277_s20 }
  0x17   : > { %p5099_p13 = scmp.ne.s32.totalorder %s243_s15, %s5098_s21  ;;  %p5106_p5 = scmp.lt.s32.totalorder %s243_s15, %s243_s15 }
  0x18   : > { %p5089_p12 = pneg %p5383_p11  ;;  %p5107_p7 = scmp.lt.s32.totalorder %s5098_s21, %s5098_s21 }
  0x1a   : > { %p5101_p0 = pnand %p5099_p13, %p5089_p12  ;;  %p5108_p9 = por %p5107_p7, %p5106_p5 }
  0x1c   : > { %p5102_p3 = pneg %p5101_p0 }
  0x1e   : > { %p5109_p10 = pnand %p5108_p9, %p5102_p3 }
  0x20   : > { %5112 = shalt.err (!%p5109_p10)
}
  0x21   : > { %s6330_s22 = smov 128   ;;  %s6331_s23 = smov 8  }
  0x22   : > { %s6341_s1 = sld [smem:[#allocation15_spill]]  ;;  %s5124_s26 = scalar_lea.vmem %s262_s18, 512 }
  0x23   : > { %p5125_p13 = scmp.ne.s32.totalorder %s262_s18, %s5124_s26  ;;  %p5132_p3 = scmp.lt.s32.totalorder %s262_s18, %s262_s18 }
  0x24   : > { %p5133_p10 = scmp.lt.s32.totalorder %s5124_s26, %s5124_s26 }
  0x25   : > { %p5127_p0 = pnand %p5125_p13, %p5089_p12 }
  0x26   : > { %p5134_p7 = por %p5133_p10, %p5132_p3 }
  0x27   : > { %p5128_p5 = pneg %p5127_p0 }
  0x28   : > { %4868 = dma.hbm_to_vmem [thread:$0]  (!%p5383_p11), %s6341_s1, 4096, %s243_s15, [#allocation6], %s6330_s22, %s6330_s22, %s6331_s23  }
  0x29   : > { %p5135_p9 = pnand %p5134_p7, %p5128_p5 }
  0x2b   : > { %5138 = shalt.err (!%p5135_p9)
}
  0x2c   : > { %s6342_s4 = sld [smem:[#allocation16_spill]]  ;;  %s5150_s15 = scalar_lea.vmem %s278_s20, 512 }
  0x2d   : > { %p5151_p1 = scmp.ne.s32.totalorder %s278_s20, %s5150_s15  ;;  %p5158_p3 = scmp.lt.s32.totalorder %s278_s20, %s278_s20 }
  0x2e   : > { %p5159_p5 = scmp.lt.s32.totalorder %s5150_s15, %s5150_s15 }
  0x2f   : > { %p5153_p13 = pnand %p5151_p1, %p5089_p12 }
  0x30   : > { %p5160_p10 = por %p5159_p5, %p5158_p3 }
  0x31   : > { %p5154_p0 = pneg %p5153_p13 }
  0x32   : > { %4871 = dma.hbm_to_vmem [thread:$0]  (!%p5383_p11), %s6342_s4, 512, %s262_s18, [#allocation6], %s6330_s22, %s6330_s22, %s6331_s23  }
  0x33   : > { %p5161_p7 = pnand %p5160_p10, %p5154_p0 }
  0x35   : > { %5164 = shalt.err (!%p5161_p7)
}
  0x36   : > { %4874 = dma.hbm_to_vmem [thread:$0]  (!%p5383_p11), %s6326_s6, 512, %s278_s20, [#allocation9], %s6330_s22, %s6330_s22, %s6331_s23  }
  0x37   : > { %s5423_s18 = sadd.s32 1, %s5265_s30   ;;  %s33_s21 = sadd.s32 1, %s5261_s29 }
  0x38   : > { %s30_s16 = ssub.s32 %s5265_s30, %s5423_s18  ;;  %p40_p12 = scmp.ne.s32.totalorder %s5261_s29, %s5257_s28 }
  0x39   : > { %p31_p1 = scmp.eq.s32.totalorder %s30_s16, 0  ;;  %p41_p9 = scmp.eq.s32.totalorder %s5265_s30, 0 }
  0x3a   : > { %p4886_p13 = scmp.lt.s32.totalorder %s5265_s30, 2  ;;  %p5437_p3 = por %p217_p2, %p40_p12 }
  0x3b   : > { %s5433_s24 = scalar_select %p31_p1, %s5261_s29, %s33_s21  }
  0x3c   : > { %p42_p0 = por %p41_p9, %p40_p12  ;;  %s294_s26 = sand.u32 1, %s5261_s29  }
  0x3d   : > { %s6343_s25 = scalar_select %p5437_p3, 1, 0 }
  0x3e   : > { %s4422_s10 = sshll.u32 %s5265_s30, 10  ;;  %s4289_s20 = sshll.u32 %s294_s26, 6 }
  0x3f   : > { %s5446_s17 = scalar_lea.hbm %s6320_s0, %s4422_s10  ;;  %s298_s19 = scalar_lea.vmem [#allocation2], %s4289_s20 }
  0x40   : > { %s306_s16 = sshll.u32 %s298_s19, 4  ;;  %p5448_p11 = pnand %p4886_p13, %p42_p0  ;;  %s5452_s16 = int_to_ptr.vmem [resolvable:$true] %s306_s16 }
  0x41   : > { %s5454_s22 = scalar_lea.sflag [#allocation3], %s294_s26  ;;  %s5165_s23 = scalar_lea.hbm %s5446_s17, 1024 }
  0x42   : > { %p5166_p2 = scmp.ne.s32.totalorder %s5446_s17, %s5165_s23  ;;  %p5167_p5 = pneg %p5448_p11 }
  0x43   : > { %s5170_s20 = scalar_lea.hbm %s6320_s0, 2048  ;;  %p5171_p1 = scmp.lt.s32.totalorder %s5446_s17, %s6320_s0 }
  0x44   : > { %p5168_p10 = pnand %p5167_p5, %p5166_p2  ;;  %p5172_p12 = scmp.lt.s32.totalorder %s5170_s20, %s5165_s23 }
  0x46   : > { %p5169_p7 = pneg %p5168_p10  ;;  %p5173_p9 = por %p5172_p12, %p5171_p1 }
  0x48   : > { %p5174_p13 = pnand %p5173_p9, %p5169_p7 }
  0x4a   : > { %5177 = shalt.err (!%p5174_p13)
}
  0x4b   : > { %s5178_s26 = scalar_lea.vmem %s5452_s16, 1024  ;;  %s5272_s1 = smov [#allocation2]  }
  0x4c   : > { %p5179_p0 = scmp.ne.s32.totalorder %s5452_s16, %s5178_s26  ;;  %s5183_s4 = sshll.u32 %s5272_s1, 4  ;;  %s5184_s4 = int_to_ptr.vmem [resolvable:$false] %s5183_s4 }
  0x4d   : > { %s5185_s10 = scalar_lea.vmem %s5184_s4, 2048  ;;  %p5186_p10 = scmp.lt.s32.totalorder %s5452_s16, %s5184_s4 }
  0x4e   : > { %p5181_p6 = pnand %p5179_p0, %p5167_p5  ;;  %p5187_p3 = scmp.lt.s32.totalorder %s5185_s10, %s5178_s26 }
  0x50   : > { %p5182_p2 = pneg %p5181_p6  ;;  %p5188_p4 = por %p5187_p3, %p5186_p10 }
  0x52   : > { %p5189_p8 = pnand %p5188_p4, %p5182_p2 }
  0x54   : > { %5192 = shalt.err (!%p5189_p8)
}
  0x55   : > { %s6345_s23 = smov 8   ;;  %s6346_s14 = smov 128  }
  0x56   : > { %4878 = dma.hbm_to_vmem [thread:$0]  (!%p5448_p11), %s5446_s17, 1024, %s5452_s16, %s5454_s22, %s6346_s14, %s6346_s14, %s6345_s23  }
  0x57   : > { %p6347_p6 = scmp.ne.s32.totalorder %s6339_s13, 0 }
  0x58   : > { %s5481_s1 = sand.u32 (!%p6347_p6), 1, %s5257_s28   ;;  %p6348_p4 = scmp.ne.s32.totalorder (!%p6347_p6), %s6337_s11, 0 }
  0x59   : > { %318 = sbr.rel (%p6347_p6) target bundleno = 3386 (0xd3a), region = 52  ;;  %s4294_s4 = sshll.u32 (!%p6347_p6), %s5481_s1, 6 }
  0x5a   : > { %s321_s20 = scalar_lea.sflag (!%p6347_p6), [#allocation3], %s5481_s1  ;;  %s324_s21 = scalar_lea.vmem (!%p6347_p6), [#allocation2], %s4294_s4 }
  0x5e   : > { %5236 = dma.done.wait (%p6348_p4), %s321_s20, 1024  }
  0x5f   : > { %5238 = vsyncadd (%p6348_p4), %s321_s20, 4294966272  ;;  %p6349_p8 = scmp.eq.s32.totalorder %s5355_s9, 0 }
  0x61   : > { %5240 = dma.done.wait (%p6349_p8), [#allocation6], 4608   ;;  %p6350_p3 = pmov %p6349_p8 }
  0x63   : > { %5242 = vsyncadd (%p6350_p3), [#allocation6], 4294962688  ;;  %p6351_p11 = pmov %p6350_p3 }
  0x64   : > { %p6352_p5 = pmov %p6350_p3 }
  0x65   : > { %5244 = dma.done.wait (%p6351_p11), [#allocation9], 512  }
  0x66   : > { %5246 = vsyncadd (%p6352_p5), [#allocation9], 4294966784  ;;  %vm379_vm0 = vcmask 261120   ;;  %v371_v0 = vld [vmem:[%s324_s21] sm:$0xff]  ;;  %v373_v1 = vld [vmem:[%s324_s21 + $0x10] sm:$0xff]  ;;  %s5273_s19 = smov 96  }
  0x67   : > { %v372_v2 = vld [vmem:[%s324_s21 + $0x8] sm:$0xff]  ;;  %v380_v3 = vsel %vm379_vm0, %v371_v0, 0.0  ;;  %v386_v4 = vsel %vm379_vm0, %v373_v1, 0.0  ;;  %v374_v5 = vld [vmem:[%s324_s21 + $0x18] sm:$0xff]  ;;  %v375_v8 = vld [vmem:[%s324_s21 + $0x20] sm:$0xff]  ;;  %vm701_vm1 = vcmask 64512  }
  0x68   : > { %381 = vadd.xlane.f32.xlu0 %v380_v3  ;;  %387 = vadd.xlane.f32.xlu1 %v386_v4  ;;  %v383_v6 = vsel %vm379_vm0, %v372_v2, 0.0  ;;  %v389_v7 = vsel %vm379_vm0, %v374_v5, 0.0  ;;  %v376_v9 = vld [vmem:[%s324_s21 + $0x28] sm:$0xff]  ;;  %v392_v10 = vsel %vm379_vm0, %v375_v8, 0.0  ;;  %v377_v12 = vld [vmem:[%s324_s21 + $0x30] sm:$0xff]  ;;  %v378_v13 = vld [vmem:[%s324_s21 + $0x38] sm:$0xff] }
  0x69   : > { %v395_v11 = vsel %vm379_vm0, %v376_v9, 0.0  ;;  %v398_v14 = vsel %vm379_vm0, %v377_v12, 0.0  ;;  %v401_v15 = vsel %vm379_vm0, %v378_v13, 0.0  ;;  %v518_v56 = vld [vmem:[#allocation7 + $0x18] sm:$0xff]  ;;  %v517_v57 = vld [vmem:[#allocation7 + $0x10] sm:$0xff]  ;;  %v516_v58 = vld [vmem:[#allocation7 + $0x8] sm:$0xff] }
  0x6a   : > { %4577 = vmatprep.subr.mxu0 %v518_v56  ;;  %4841 = vmatprep.subr.mxu1 %v518_v56  ;;  %v515_v59 = vld [vmem:[#allocation7] sm:$0xff]  ;;  %vm1060_vm2 = vcmask 130048   ;;  %s5274_s26 = smov 64   ;;  %s5275_s10 = smov 88   ;;  %vm4009_vm3 = vcmask 195584  }
  0x6b   : > { %4578 = vmatpush3.msra.mxu0 %v518_v56  ;;  %4845 = vmatpush3.msra.mxu1 %v518_v56  ;;  %s5276_s23 = smov 120   ;;  %s5277_s14 = smov 56  }
  0x6c   : > { %384 = vadd.xlane.f32.xlu0 %v383_v6  ;;  %390 = vadd.xlane.f32.xlu1 %v389_v7  ;;  %s5278_s20 = smov 80   ;;  %s5279_s21 = smov 112  }
  0x6d   : > { %4579 = vmatprep.subr.mxu0 %v517_v57  ;;  %4842 = vmatprep.subr.mxu1 %v517_v57  ;;  %s5280_s11 = smov 48   ;;  %s5281_s13 = smov 72  }
  0x6e   : > { %4580 = vmatpush3.msra.mxu0 %v517_v57  ;;  %4846 = vmatpush3.msra.mxu1 %v517_v57  ;;  %s5282_s22 = smov 104   ;;  %s5283_s17 = smov 40  }
  0x6f   : > { %4581 = vmatprep.subr.mxu0 %v516_v58  ;;  %4843 = vmatprep.subr.mxu1 %v516_v58  ;;  %s5284_s16 = smov 8   ;;  %s5285_s15 = smov 16  }
  0x70   : > { %393 = vadd.xlane.f32.xlu0 %v392_v10  ;;  %396 = vadd.xlane.f32.xlu1 %v395_v11  ;;  %p6353_p1 = scmp.ne.s32.totalorder %s6343_s25, 0 }
  0x71   : > { %4582 = vmatpush3.msra.mxu0 %v516_v58  ;;  %4847 = vmatpush3.msra.mxu1 %v516_v58 }
  0x72   : > { %4583 = vmatprep.subr.mxu0 %v515_v59  ;;  %4844 = vmatprep.subr.mxu1 %v515_v59 }
  0x73   : > { %4584 = vmatpush3.msra.mxu0 %v515_v59  ;;  %4848 = vmatpush3.msra.mxu1 %v515_v59 }
  0x74   : > { %399 = vadd.xlane.f32.xlu0 %v398_v14  ;;  %402 = vadd.xlane.f32.xlu1 %v401_v15 }
  0xf1   : > { %v382_v16 = vpop.xlane.xlu0 %381  ;;  %v388_v17 = vpop.xlane.xlu1 %387 }
  0xf2   : > { %v405_v18 = vmul.f32 0.03125, %v382_v16  ;;  %v407_v19 = vmul.f32 0.03125, %v388_v17 }
  0xf4   : > { %v5507_v20 = vsub.f32 %v371_v0, %v405_v18  ;;  %v5509_v21 = vsub.f32 %v373_v1, %v407_v19 }
  0xf5   : > { %v385_v22 = vpop.xlane.xlu0 %384  ;;  %v391_v23 = vpop.xlane.xlu1 %390 }
  0xf6   : > { %v406_v24 = vmul.f32 0.03125, %v385_v22  ;;  %v408_v25 = vmul.f32 0.03125, %v391_v23  ;;  %v421_v26 = vmul.f32 %v5507_v20, %v5507_v20  ;;  %v423_v27 = vmul.f32 %v5509_v21, %v5509_v21  ;;  %v4299_v22 = vld [vmem:[%s6322_s2] ss:$0 sm:$0xff] }
  0xf8   : > { %v5515_v28 = vsub.f32 %v372_v2, %v406_v24  ;;  %v5517_v29 = vsub.f32 %v374_v5, %v408_v25  ;;  %v429_v30 = vsel %vm379_vm0, %v421_v26, 0.0  ;;  %v435_v33 = vsel %vm379_vm0, %v423_v27, 0.0  ;;  %v4300_v25 = vld [vmem:[%s6323_s3] ss:$0 sm:$0xff] }
  0xf9   : > { %430 = vadd.xlane.f32.xlu0 %v429_v30  ;;  %v394_v31 = vpop.xlane.xlu0 %393  ;;  %v397_v32 = vpop.xlane.xlu1 %396 }
  0xfa   : > { %v409_v34 = vmul.f32 0.03125, %v394_v31  ;;  %v410_v35 = vmul.f32 0.03125, %v397_v32  ;;  %v422_v36 = vmul.f32 %v5515_v28, %v5515_v28  ;;  %v424_v37 = vmul.f32 %v5517_v29, %v5517_v29 }
  0xfc   : > { %v5525_v38 = vsub.f32 %v375_v8, %v409_v34  ;;  %v5527_v39 = vsub.f32 %v376_v9, %v410_v35  ;;  %v432_v40 = vsel %vm379_vm0, %v422_v36, 0.0  ;;  %v438_v43 = vsel %vm379_vm0, %v424_v37, 0.0 }
  0xfd   : > { %436 = vadd.xlane.f32.xlu0 %v435_v33  ;;  %433 = vadd.xlane.f32.xlu1 %v432_v40  ;;  %v400_v41 = vpop.xlane.xlu0 %399  ;;  %v403_v42 = vpop.xlane.xlu1 %402 }
  0xfe   : > { %v411_v44 = vmul.f32 0.03125, %v400_v41  ;;  %v412_v45 = vmul.f32 0.03125, %v403_v42  ;;  %v425_v46 = vmul.f32 %v5525_v38, %v5525_v38  ;;  %v426_v47 = vmul.f32 %v5527_v39, %v5527_v39 }
 0x100   : > { %v5535_v48 = vsub.f32 %v377_v12, %v411_v44  ;;  %v5537_v49 = vsub.f32 %v378_v13, %v412_v45  ;;  %v441_v50 = vsel %vm379_vm0, %v425_v46, 0.0  ;;  %v444_v51 = vsel %vm379_vm0, %v426_v47, 0.0 }
 0x101   : > { %439 = vadd.xlane.f32.xlu1 %v438_v43  ;;  %442 = vadd.xlane.f32.xlu0 %v441_v50 }
 0x102   : > { %v427_v52 = vmul.f32 %v5535_v48, %v5535_v48  ;;  %v428_v53 = vmul.f32 %v5537_v49, %v5537_v49 }
 0x104   : > { %v447_v54 = vsel %vm379_vm0, %v427_v52, 0.0  ;;  %v450_v55 = vsel %vm379_vm0, %v428_v53, 0.0 }
 0x105   : > { %445 = vadd.xlane.f32.xlu1 %v444_v51  ;;  %448 = vadd.xlane.f32.xlu0 %v447_v54 }
 0x109   : > { %451 = vadd.xlane.f32.xlu1 %v450_v55 }
 0x182   : > { %v431_v60 = vpop.xlane.xlu0 %430 }
 0x183   : > { %v453_v61 = vmul.f32 0.03125, %v431_v60 }
 0x185   : > { %v461_v62 = vadd.f32 1e-05, %v453_v61 }
 0x186   : > { %v434_v63 = vpop.xlane.xlu1 %433  ;;  %v437_v0 = vpop.xlane.xlu0 %436 }
 0x187   : > { %4943 = vrsqrt.f32 %v461_v62  ;;  %v454_v1 = vmul.f32 0.03125, %v434_v63  ;;  %v455_v2 = vmul.f32 0.03125, %v437_v0 }
 0x189   : > { %v462_v3 = vadd.f32 1e-05, %v454_v1  ;;  %v463_v4 = vadd.f32 1e-05, %v455_v2 }
 0x18a   : > { %v440_v5 = vpop.xlane.xlu1 %439  ;;  %v443_v6 = vpop.xlane.xlu0 %442 }
 0x18b   : > { %4945 = vrsqrt.f32 %v462_v3  ;;  %v456_v7 = vmul.f32 0.03125, %v440_v5  ;;  %v457_v8 = vmul.f32 0.03125, %v443_v6 }
 0x18c   : > { %4947 = vrsqrt.f32 %v463_v4 }
 0x18d   : > { %v464_v9 = vadd.f32 1e-05, %v456_v7  ;;  %v465_v10 = vadd.f32 1e-05, %v457_v8 }
 0x18e   : > { %v446_v11 = vpop.xlane.xlu1 %445  ;;  %v449_v12 = vpop.xlane.xlu0 %448 }
 0x18f   : > { %4949 = vrsqrt.f32 %v464_v9  ;;  %v458_v13 = vmul.f32 0.03125, %v446_v11  ;;  %v459_v14 = vmul.f32 0.03125, %v449_v12 }
 0x190   : > { %4951 = vrsqrt.f32 %v465_v10 }
 0x191   : > { %v466_v15 = vadd.f32 1e-05, %v458_v13  ;;  %v467_v16 = vadd.f32 1e-05, %v459_v14 }
 0x192   : > { %v452_v17 = vpop.xlane.xlu1 %451 }
 0x193   : > { %4953 = vrsqrt.f32 %v466_v15  ;;  %v460_v18 = vmul.f32 0.03125, %v452_v17 }
 0x194   : > { %v4944_v19 = vpop.eup %4943  ;;  %4955 = vrsqrt.f32 %v467_v16 }
 0x195   : > { %v468_v23 = vadd.f32 1e-05, %v460_v18  ;;  %v477_v24 = vmul.f32 %v4944_v19, %v5507_v20 }
 0x197   : > { %4957 = vrsqrt.f32 %v468_v23  ;;  %v492_v26 = vmul.f32 %v4299_v22, %v477_v24 }
 0x198   : > { %v4946_v27 = vpop.eup %4945 }
 0x199   : > { %v4948_v30 = vpop.eup %4947  ;;  %v507_v31 = vadd.f32 %v4300_v25, %v492_v26  ;;  %v478_v32 = vmul.f32 %v4946_v27, %v5515_v28  ;;  %v663_v27 = vld [vmem:[#allocation5] sm:$0xff] }
 0x19a   : > { %v479_v33 = vmul.f32 %v4948_v30, %v5509_v21 }
 0x19b   : > { %4585 = vmatprep.mubr.msk.f32.mxu0 %vm379_vm0, %v507_v31  ;;  %v493_v34 = vmul.f32 %v4299_v22, %v478_v32 }
 0x19c   : > { %v4950_v35 = vpop.eup %4949  ;;  %v494_v36 = vmul.f32 %v4299_v22, %v479_v33 }
 0x19d   : > { %v4952_v37 = vpop.eup %4951  ;;  %v508_v20 = vadd.f32 %v4300_v25, %v493_v34  ;;  %v480_v40 = vmul.f32 %v4950_v35, %v5517_v29  ;;  %v680_v35 = vld [vmem:[#allocation5 + $0x88] sm:$0xff] }
 0x19e   : > { %v509_v41 = vadd.f32 %v4300_v25, %v494_v36  ;;  %v481_v42 = vmul.f32 %v4952_v37, %v5525_v38 }
 0x19f   : > { %4586 = vmatmul.mubr.msk.f32.vlgmr.msra.gmra.mxu0 %vm379_vm0, %v508_v20  ;;  %v495_v43 = vmul.f32 %v4299_v22, %v480_v40  ;;  %v679_v20 = vld [vmem:[#allocation5 + $0x80] sm:$0xff] }
 0x1a0   : > { %v4954_v44 = vpop.eup %4953  ;;  %4588 = vmatprep.mubr.msk.f32.mxu0 %vm379_vm0, %v509_v41  ;;  %v496_v28 = vmul.f32 %v4299_v22, %v481_v42  ;;  %v672_v41 = vld [vmem:[#allocation5 + $0x48] sm:$0xff] }
 0x1a1   : > { %v4956_v21 = vpop.eup %4955  ;;  %v510_v45 = vadd.f32 %v4300_v25, %v495_v43  ;;  %v482_v46 = vmul.f32 %v4954_v44, %v5527_v39 }
 0x1a2   : > { %v511_v47 = vadd.f32 %v4300_v25, %v496_v28  ;;  %v483_v50 = vmul.f32 %v4956_v21, %v5535_v48  ;;  %v4301_v48 = vld [vmem:[%s6325_s5] ss:$0 sm:$0xff]  ;;  %v688_v21 = vld [vmem:[#allocation5 + $0xc8] sm:$0xff] }
 0x1a3   : > { %4589 = vmatmul.mubr.msk.f32.gmra.mxu0 %vm379_vm0, %v510_v45  ;;  %v497_v29 = vmul.f32 %v4299_v22, %v482_v46 }
 0x1a4   : > { %v4958_v51 = vpop.eup %4957  ;;  %4591 = vmatprep.mubr.msk.f32.mxu1 %vm379_vm0, %v511_v47  ;;  %v498_v38 = vmul.f32 %v4299_v22, %v483_v50  ;;  %v671_v47 = vld [vmem:[#allocation5 + $0x40] sm:$0xff] }
 0x1a5   : > { %v512_v52 = vadd.f32 %v4300_v25, %v497_v29  ;;  %v484_v53 = vmul.f32 %v4958_v51, %v5537_v49 }
 0x1a6   : > { %v513_v54 = vadd.f32 %v4300_v25, %v498_v38 }
 0x1a7   : > { %4592 = vmatmul.mubr.msk.f32.vlgmr.msra.gmra.mxu1 %vm379_vm0, %v512_v52  ;;  %v499_v55 = vmul.f32 %v4299_v22, %v484_v53 }
 0x1a8   : > { %4594 = vmatprep.mubr.msk.f32.mxu1 %vm379_vm0, %v513_v54  ;;  %v687_v54 = vld [vmem:[#allocation5 + $0xc0] sm:$0xff] }
 0x1a9   : > { %v514_v39 = vadd.f32 %v4300_v25, %v499_v55  ;;  %v664_v25 = vld [vmem:[#allocation5 + $0x8] sm:$0xff] }
 0x1ab   : > { %4595 = vmatmul.mubr.msk.f32.gmra.mxu1 %vm379_vm0, %v514_v39 }
 0x25f   : > { %v4587_v56 = vpop.f32.mrf.mxu0 }
 0x260   : > { %v5572_v57 = vadd.f32 %v4587_v56, %v4301_v48 }
 0x261   : > { %v616_v58 = vpop.f32.mrf.mxu0 }
 0x262   : > { %v5574_v59 = vadd.f32 %v4301_v48, %v616_v58  ;;  %699 = vrot.lane.b32.xlu0 %v5572_v57, %s5273_s19  ;;  %v5612_v12 = vmul.f32 0.35355338, %v5572_v57 }
 0x263   : > { %v4590_v49 = vpop.f32.mrf.mxu0 }
 0x264   : > { %697 = vrot.lane.b32.xlu1 %v5574_v59, %s5273_s19  ;;  %v5579_v60 = vmul.f32 0.35355338, %v5574_v59  ;;  %v5581_v61 = vadd.f32 %v4590_v49, %v4301_v48 }
 0x265   : > { %v626_v62 = vpop.f32.mrf.mxu0 }
 0x266   : > { %4601 = vmatprep.mubr.msk.f32.mxu1 %vm701_vm1, %v5579_v60  ;;  %v5588_v2 = vadd.f32 %v4301_v48, %v626_v62  ;;  %v5629_v18 = vmul.f32 0.35355338, %v5581_v61 }
 0x267   : > { %v4593_v63 = vpop.f32.mrf.mxu1 }
 0x268   : > { %v5585_v0 = vadd.f32 %v4593_v63, %v4301_v48  ;;  %791 = vrot.lane.b32.xlu1 %v5581_v61, %s5273_s19  ;;  %v5615_v14 = vmul.f32 0.35355338, %v5588_v2 }
 0x269   : > { %v636_v1 = vpop.f32.mrf.mxu1 }
 0x26a   : > { %v5590_v3 = vadd.f32 %v4301_v48, %v636_v1  ;;  %882 = vrot.lane.b32.xlu0 %v5585_v0, %s5273_s19  ;;  %v5638_v22 = vmul.f32 0.35355338, %v5585_v0 }
 0x26b   : > { %v4596_v4 = vpop.f32.mrf.mxu1 }
 0x26c   : > { %v5593_v5 = vadd.f32 %v4596_v4, %v4301_v48  ;;  %789 = vrot.lane.b32.xlu1 %v5588_v2, %s5273_s19  ;;  %v5597_v6 = vmul.f32 0.35355338, %v5590_v3 }
 0x26d   : > { %v646_v7 = vpop.f32.mrf.mxu1 }
 0x26e   : > { %4615 = vmatprep.mubr.msk.f32.mxu0 %vm701_vm1, %v5597_v6  ;;  %973 = vrot.lane.b32.xlu0 %v5593_v5, %s5273_s19  ;;  %v5603_v8 = vadd.f32 %v4301_v48, %v646_v7  ;;  %v5648_v24 = vmul.f32 0.35355338, %v5593_v5 }
 0x270   : > { %880 = vrot.lane.b32.xlu1 %v5590_v3, %s5273_s19  ;;  %v5633_v19 = vmul.f32 0.35355338, %v5603_v8 }
 0x274   : > { %971 = vrot.lane.b32.xlu1 %v5603_v8, %s5273_s19  ;;  %s5286_s19 = smov 24  }
 0x2d4   : > { %v700_v9 = vpop.permute.xlu0 %699 }
 0x2d5   : > { %4597 = vmatprep.subr.msk.mxu1 %vm701_vm1, %v700_v9 }
 0x2d6   : > { %v698_v10 = vpop.permute.xlu1 %697  ;;  %4598 = vmatpush3.xpose.msk.msra.mxu1 %vm701_vm1, %v700_v9 }
 0x2d7   : > { %4599 = vmatprep.subr.msk.mxu1 %vm701_vm1, %v698_v10 }
 0x2da   : > { %v792_v11 = vpop.permute.xlu1 %791  ;;  %4600 = vmatpush3.xpose.msk.msra.mxu1 %vm701_vm1, %v698_v10 }
 0x2db   : > { %4604 = vmatprep.subr.msk.mxu1 %vm701_vm1, %v792_v11 }
 0x2dc   : > { %v883_v13 = vpop.permute.xlu0 %882 }
 0x2dd   : > { %4602 = vmatmul.mubr.msk.f32.vlgmr.msra.gmra.mxu1 %vm701_vm1, %v5612_v12  ;;  %4611 = vmatprep.subr.msk.mxu0 %vm701_vm1, %v883_v13 }
 0x2de   : > { %v790_v15 = vpop.permute.xlu1 %789  ;;  %4605 = vmatpush3.xpose.msk.msra.mxu1 %vm701_vm1, %v792_v11  ;;  %4608 = vmatprep.mubr.msk.f32.mxu1 %vm701_vm1, %v5615_v14 }
 0x2df   : > { %4612 = vmatpush3.xpose.msk.msra.mxu0 %vm701_vm1, %v883_v13  ;;  %4606 = vmatprep.subr.msk.mxu1 %vm701_vm1, %v790_v15 }
 0x2e0   : > { %v974_v16 = vpop.permute.xlu0 %973 }
 0x2e2   : > { %v881_v17 = vpop.permute.xlu1 %880  ;;  %4607 = vmatpush3.xpose.msk.msra.mxu1 %vm701_vm1, %v790_v15 }
 0x2e3   : > { %4613 = vmatprep.subr.msk.mxu0 %vm701_vm1, %v881_v17  ;;  %4618 = vmatprep.subr.msk.mxu1 %vm701_vm1, %v974_v16 }
 0x2e4   : > { %4614 = vmatpush3.xpose.msk.msra.mxu0 %vm701_vm1, %v881_v17 }
 0x2e5   : > { %4609 = vmatmul.mubr.msk.f32.vlgmr.msra.gmra.mxu1 %vm701_vm1, %v5629_v18 }
 0x2e6   : > { %v972_v23 = vpop.permute.xlu1 %971  ;;  %4619 = vmatpush3.xpose.msk.msra.mxu1 %vm701_vm1, %v974_v16  ;;  %4622 = vmatprep.mubr.msk.f32.mxu1 %vm701_vm1, %v5633_v19 }
 0x2e7   : > { %4616 = vmatmul.mubr.msk.f32.vlgmr.msra.gmra.mxu0 %vm701_vm1, %v5638_v22  ;;  %4620 = vmatprep.subr.msk.mxu1 %vm701_vm1, %v972_v23 }
 0x2ea   : > { %4621 = vmatpush3.xpose.msk.msra.mxu1 %vm701_vm1, %v972_v23 }
 0x2ed   : > { %4623 = vmatmul.mubr.msk.f32.vlgmr.msra.gmra.mxu1 %vm701_vm1, %v5648_v24 }
 0x39d   : > { %v4603_v26 = vpop.f32.mrf.mxu1 }
 0x39e   : > { %v784_v30 = vadd.f32 %v4603_v26, %v664_v25 }
 0x39f   : > { %v778_v31 = vpop.f32.mrf.mxu1 }
 0x3a0   : > { %v779_v32 = vadd.f32 %v778_v31, %v663_v27  ;;  %v1064_v33 = vsel %vm1060_vm2, %v784_v30, -inf }
 0x3a1   : > { %1065 = vmax.xlane.f32.xlu1 %v1064_v33 }
 0x3a2   : > { %v1061_v34 = vsel %vm1060_vm2, %v779_v32, -inf }
 0x3a3   : > { %1062 = vmax.xlane.f32.xlu0 %v1061_v34 }
 0x3a5   : > { %v4610_v36 = vpop.f32.mrf.mxu1 }
 0x3a6   : > { %v875_v45 = vadd.f32 %v4610_v36, %v672_v41 }
 0x3a7   : > { %v4617_v37 = vpop.f32.mrf.mxu0  ;;  %v869_v28 = vpop.f32.mrf.mxu1 }
 0x3a8   : > { %v966_v40 = vadd.f32 %v4617_v37, %v680_v35  ;;  %v5656_v51 = vadd.f32 %v869_v28, %v671_v47  ;;  %v1070_v38 = vsel %vm1060_vm2, %v875_v45, -inf }
 0x3a9   : > { %v960_v42 = vpop.f32.mrf.mxu0 }
 0x3aa   : > { %v961_v43 = vadd.f32 %v960_v42, %v679_v20  ;;  %v1076_v44 = vsel %vm1060_vm2, %v966_v40, -inf  ;;  %v1067_v39 = vsel %vm1060_vm2, %v5656_v51, -inf }
 0x3ab   : > { %1077 = vmax.xlane.f32.xlu1 %v1076_v44 }
 0x3ac   : > { %v1073_v46 = vsel %vm1060_vm2, %v961_v43, -inf }
 0x3ad   : > { %1074 = vmax.xlane.f32.xlu0 %v1073_v46  ;;  %v4624_v50 = vpop.f32.mrf.mxu1 }
 0x3ae   : > { %v1057_v29 = vadd.f32 %v4624_v50, %v688_v21 }
 0x3af   : > { %v1051_v53 = vpop.f32.mrf.mxu1 }
 0x3b0   : > { %v1082_v52 = vsel %vm1060_vm2, %v1057_v29, -inf  ;;  %v5660_v55 = vadd.f32 %v1051_v53, %v687_v54 }
 0x3b1   : > { %1071 = vmax.xlane.f32.xlu0 %v1070_v38  ;;  %1083 = vmax.xlane.f32.xlu1 %v1082_v52 }
 0x3b2   : > { %v1079_v48 = vsel %vm1060_vm2, %v5660_v55, -inf }
 0x3b5   : > { %1068 = vmax.xlane.f32.xlu0 %v1067_v39 }
 0x3b9   : > { %1080 = vmax.xlane.f32.xlu0 %v1079_v48 }
 0x3c2   : > { %1149 = vrot.lane.b32.xlu1 %v5574_v59, %s5274_s26 }
 0x3c6   : > { %1238 = vrot.lane.b32.xlu1 %v5581_v61, %s5274_s26 }
 0x3ca   : > { %1325 = vrot.lane.b32.xlu1 %v5585_v0, %s5274_s26 }
 0x3ce   : > { %1323 = vrot.lane.b32.xlu1 %v5590_v3, %s5274_s26 }
 0x3cf   : > { %1151 = vrot.lane.b32.xlu0 %v5572_v57, %s5274_s26 }
 0x3d2   : > { %1503 = vrot.lane.b32.xlu1 %v5572_v57, %s5275_s10 }
 0x3d3   : > { %1236 = vrot.lane.b32.xlu0 %v5588_v2, %s5274_s26 }
 0x3d6   : > { %1501 = vrot.lane.b32.xlu1 %v5574_v59, %s5275_s10 }
 0x3d7   : > { %1412 = vrot.lane.b32.xlu0 %v5593_v5, %s5274_s26 }
 0x3da   : > { %1497 = vrot.lane.b32.xlu1 %v5579_v60, %s5276_s23 }
 0x3db   : > { %1410 = vrot.lane.b32.xlu0 %v5603_v8, %s5274_s26 }
 0x3de   : > { %1685 = vrot.lane.b32.xlu1 %v5585_v0, %s5275_s10 }
 0x3df   : > { %1594 = vrot.lane.b32.xlu0 %v5581_v61, %s5275_s10 }
 0x3e2   : > { %1588 = vrot.lane.b32.xlu1 %v5615_v14, %s5276_s23 }
 0x3e3   : > { %1592 = vrot.lane.b32.xlu0 %v5588_v2, %s5275_s10 }
 0x3e7   : > { %1499 = vrot.lane.b32.xlu0 %v5612_v12, %s5276_s23 }
 0x42a   : > { %v1066_v56 = vpop.xlane.xlu1 %1065 }
 0x42b   : > { %v1086_v58 = vsub.f32 %v784_v30, %v1066_v56 }
 0x42c   : > { %v1063_v49 = vpop.xlane.xlu0 %1062 }
 0x42d   : > { %v1095_v62 = vmul.f32 1.442695, %v1086_v58  ;;  %v1085_v63 = vsub.f32 %v779_v32, %v1063_v49 }
 0x42f   : > { %4959 = vpow2.f32 %v1095_v62  ;;  %v1093_v1 = vmul.f32 1.442695, %v1085_v63 }
 0x431   : > { %4961 = vpow2.f32 %v1093_v1 }
 0x434   : > { %v1078_v4 = vpop.xlane.xlu1 %1077 }
 0x435   : > { %v1090_v7 = vsub.f32 %v966_v40, %v1078_v4 }
 0x436   : > { %v1075_v9 = vpop.xlane.xlu0 %1074 }
 0x437   : > { %v1103_v10 = vmul.f32 1.442695, %v1090_v7  ;;  %v1089_v11 = vsub.f32 %v961_v43, %v1075_v9 }
 0x439   : > { %4963 = vpow2.f32 %v1103_v10  ;;  %v1101_v13 = vmul.f32 1.442695, %v1089_v11 }
 0x43a   : > { %v1084_v15 = vpop.xlane.xlu1 %1083  ;;  %v1072_v16 = vpop.xlane.xlu0 %1071 }
 0x43b   : > { %4965 = vpow2.f32 %v1101_v13  ;;  %v1092_v17 = vsub.f32 %v1057_v29, %v1084_v15  ;;  %v1088_v23 = vsub.f32 %v875_v45, %v1072_v16 }
 0x43c   : > { %v5690_v25 = vpop.eup %4959 }
 0x43d   : > { %v1107_v26 = vmul.f32 1.442695, %v1092_v17  ;;  %v1099_v27 = vmul.f32 1.442695, %v1088_v23  ;;  %v1112_v30 = vsel %vm1060_vm2, %v5690_v25, 0.0 }
 0x43e   : > { %v5694_v31 = vpop.eup %4961  ;;  %1113 = vadd.xlane.f32.xlu1 %v1112_v30  ;;  %v1150_v32 = vpop.permute.xlu1 %1149 }
 0x43f   : > { %v1069_v33 = vpop.xlane.xlu0 %1068  ;;  %4967 = vpow2.f32 %v1107_v26  ;;  %v1109_v35 = vsel %vm1060_vm2, %v5694_v31, 0.0 }
 0x440   : > { %v1087_v34 = vsub.f32 %v5656_v51, %v1069_v33  ;;  %4969 = vpow2.f32 %v1099_v27  ;;  %1110 = vadd.xlane.f32.xlu0 %v1109_v35 }
 0x442   : > { %v1097_v36 = vmul.f32 1.442695, %v1087_v34  ;;  %v1239_v37 = vpop.permute.xlu1 %1238 }
 0x443   : > { %v1081_v20 = vpop.xlane.xlu0 %1080  ;;  %4632 = vmatprep.subr.mxu1 %v1239_v37 }
 0x444   : > { %4971 = vpow2.f32 %v1097_v36  ;;  %v1091_v40 = vsub.f32 %v5660_v55, %v1081_v20  ;;  %4633 = vmatpush3.msra.mxu1 %v1239_v37 }
 0x446   : > { %v1105_v41 = vmul.f32 1.442695, %v1091_v40  ;;  %v5700_v42 = vpop.eup %4963  ;;  %v1326_v21 = vpop.permute.xlu1 %1325 }
 0x447   : > { %v1152_v43 = vpop.permute.xlu0 %1151  ;;  %v1124_v44 = vsel %vm1060_vm2, %v5700_v42, 0.0 }
 0x448   : > { %4973 = vpow2.f32 %v1105_v41  ;;  %4625 = vmatprep.subr.mxu0 %v1152_v43  ;;  %v5704_v28 = vpop.eup %4965  ;;  %1125 = vadd.xlane.f32.xlu1 %v1124_v44 }
 0x449   : > { %4626 = vmatpush3.msra.mxu0 %v1152_v43  ;;  %v1121_v46 = vsel %vm1060_vm2, %v5704_v28, 0.0 }
 0x44a   : > { %4627 = vmatprep.subr.mxu0 %v1150_v32  ;;  %v1324_v39 = vpop.permute.xlu1 %1323 }
 0x44b   : > { %4628 = vmatpush3.msra.mxu0 %v1150_v32  ;;  %v1237_v45 = vpop.permute.xlu0 %1236 }
 0x44c   : > { %4634 = vmatprep.subr.mxu1 %v1237_v45  ;;  %4639 = vmatprep.subr.mxu0 %v1326_v21  ;;  %v5708_v47 = vpop.eup %4967 }
 0x44d   : > { %1122 = vadd.xlane.f32.xlu1 %v1121_v46  ;;  %4635 = vmatpush3.msra.mxu1 %v1237_v45  ;;  %v5710_v50 = vpop.eup %4969  ;;  %v1130_v38 = vsel %vm1060_vm2, %v5708_v47, 0.0 }
 0x44e   : > { %v1118_v29 = vsel %vm1060_vm2, %v5710_v50, 0.0  ;;  %v1504_v48 = vpop.permute.xlu1 %1503 }
 0x44f   : > { %v5714_v51 = vpop.permute.xlu0 %1412  ;;  %1119 = vadd.xlane.f32.xlu0 %v1118_v29 }
 0x450   : > { %4646 = vmatprep.subr.mxu1 %v5714_v51 }
 0x451   : > { %v5719_v52 = vpop.eup %4971  ;;  %1131 = vadd.xlane.f32.xlu1 %v1130_v38 }
 0x452   : > { %v1115_v53 = vsel %vm1060_vm2, %v5719_v52, 0.0  ;;  %v1502_v56 = vpop.permute.xlu1 %1501 }
 0x453   : > { %1116 = vadd.xlane.f32.xlu0 %v1115_v53  ;;  %v1411_v58 = vpop.permute.xlu0 %1410 }
 0x455   : > { %v5723_v54 = vpop.eup %4973 }
 0x456   : > { %v1127_v55 = vsel %vm1060_vm2, %v5723_v54, 0.0  ;;  %v1498_v49 = vpop.permute.xlu1 %1497 }
 0x457   : > { %1128 = vadd.xlane.f32.xlu0 %v1127_v55  ;;  %v5743_v62 = vpop.permute.xlu0 %1594 }
 0x45a   : > { %v1686_v63 = vpop.permute.xlu1 %1685 }
 0x45b   : > { %v5745_v1 = vpop.permute.xlu0 %1592 }
 0x45e   : > { %v5747_v4 = vpop.permute.xlu1 %1588 }
 0x45f   : > { %v1500_v7 = vpop.permute.xlu0 %1499 }
 0x462   : > { %1776 = vrot.lane.b32.xlu1 %v5593_v5, %s5275_s10 }
 0x466   : > { %1679 = vrot.lane.b32.xlu1 %v5597_v6, %s5276_s23 }
 0x46a   : > { %1774 = vrot.lane.b32.xlu1 %v5603_v8, %s5275_s10 }
 0x46d   : > { %1683 = vrot.lane.b32.xlu0 %v5590_v3, %s5275_s10 }
 0x46e   : > { %1772 = vrot.lane.b32.xlu1 %v5648_v24, %s5276_s23 }
 0x471   : > { %1590 = vrot.lane.b32.xlu0 %v5629_v18, %s5276_s23 }
 0x475   : > { %1681 = vrot.lane.b32.xlu0 %v5638_v22, %s5276_s23 }
 0x479   : > { %1770 = vrot.lane.b32.xlu0 %v5633_v19, %s5276_s23  ;;  %s368_s23 = scalar_lea.vmem [#allocation10], %s4294_s4  ;;  %s4424_s4 = sshll.u32 %s5355_s9, 10 }
 0x47a   : > { %s4167_s9 = scalar_lea.sflag [#allocation4], %s5481_s1 }
 0x4c7   : > { %v1114_v9 = vpop.xlane.xlu1 %1113 }
 0x4c8   : > { %4975 = vrcp.f32 %v1114_v9 }
 0x4c9   : > { %v1111_v10 = vpop.xlane.xlu0 %1110 }
 0x4ca   : > { %4977 = vrcp.f32 %v1111_v10  ;;  %v681_v10 = vld [vmem:[#allocation5 + $0x90] sm:$0xff] }
 0x4d1   : > { %v1126_v11 = vpop.xlane.xlu1 %1125 }
 0x4d2   : > { %4979 = vrcp.f32 %v1126_v11 }
 0x4d5   : > { %v4976_v15 = vpop.eup %4975 }
 0x4d6   : > { %v1123_v13 = vpop.xlane.xlu1 %1122  ;;  %v1136_v26 = vmul.f32 %v4976_v15, %v5690_v25  ;;  %v674_v15 = vld [vmem:[#allocation5 + $0x58] sm:$0xff] }
 0x4d7   : > { %4981 = vrcp.f32 %v1123_v13  ;;  %v4978_v16 = vpop.eup %4977 }
 0x4d8   : > { %v1120_v17 = vpop.xlane.xlu0 %1119  ;;  %v1134_v23 = vmul.f32 %v4978_v16, %v5694_v31 }
 0x4d9   : > { %4983 = vrcp.f32 %v1120_v17 }
 0x4da   : > { %4629 = vmatprep.mubr.msk.f32.mxu0 %vm1060_vm2, %v1134_v23  ;;  %v1132_v30 = vpop.xlane.xlu1 %1131 }
 0x4db   : > { %4630 = vmatmul.mubr.msk.f32.vlgmr.msra.gmra.mxu0 %vm1060_vm2, %v1136_v26 }
 0x4dc   : > { %4640 = vmatpush3.msra.mxu0 %v1326_v21  ;;  %v1117_v27 = vpop.xlane.xlu0 %1116 }
 0x4dd   : > { %4985 = vrcp.f32 %v1117_v27  ;;  %4641 = vmatprep.subr.mxu0 %v1324_v39 }
 0x4de   : > { %4642 = vmatpush3.msra.mxu0 %v1324_v39  ;;  %4987 = vrcp.f32 %v1132_v30  ;;  %v1777_v20 = vpop.permute.xlu1 %1776 }
 0x4df   : > { %4653 = vmatprep.subr.msk.mxu0 %vm701_vm1, %v1504_v48  ;;  %v4980_v33 = vpop.eup %4979 }
 0x4e0   : > { %v1129_v32 = vpop.xlane.xlu0 %1128  ;;  %v1144_v34 = vmul.f32 %v4980_v33, %v5700_v42  ;;  %v673_v33 = vld [vmem:[#allocation5 + $0x50] sm:$0xff] }
 0x4e1   : > { %4989 = vrcp.f32 %v1129_v32 }
 0x4e2   : > { %v1680_v21 = vpop.permute.xlu1 %1679 }
 0x4e4   : > { %v4982_v31 = vpop.eup %4981  ;;  %v1684_v36 = vpop.permute.xlu0 %1683 }
 0x4e5   : > { %v1142_v25 = vmul.f32 %v4982_v31, %v5704_v28 }
 0x4e6   : > { %v4984_v35 = vpop.eup %4983 }
 0x4e7   : > { %4643 = vmatprep.mubr.msk.f32.mxu0 %vm1060_vm2, %v1142_v25  ;;  %v1140_v41 = vmul.f32 %v4984_v35, %v5710_v50  ;;  %v1775_v50 = vpop.permute.xlu1 %1774 }
 0x4e8   : > { %4644 = vmatmul.mubr.msk.f32.vlgmr.msra.gmra.mxu0 %vm1060_vm2, %v1144_v34  ;;  %v1591_v44 = vpop.permute.xlu0 %1590  ;;  %v690_v34 = vld [vmem:[#allocation5 + $0xd8] sm:$0xff] }
 0x4e9   : > { %4654 = vmatpush3.xpose.msk.msra.mxu0 %vm701_vm1, %v1504_v48  ;;  %4657 = vmatprep.mubr.msk.f32.mxu0 %vm701_vm1, %v1498_v49  ;;  %v665_v48 = vld [vmem:[#allocation5 + $0x10] sm:$0xff] }
 0x4ea   : > { %4655 = vmatprep.subr.msk.mxu0 %vm701_vm1, %v1502_v56  ;;  %v4986_v37 = vpop.eup %4985 }
 0x4eb   : > { %v1138_v40 = vmul.f32 %v4986_v37, %v5719_v52  ;;  %v4988_v42 = vpop.eup %4987  ;;  %v1773_v29 = vpop.permute.xlu1 %1772 }
 0x4ec   : > { %v1148_v45 = vmul.f32 %v4988_v42, %v5708_v47  ;;  %v1682_v46 = vpop.permute.xlu0 %1681 }
 0x4ed   : > { %4656 = vmatpush3.xpose.msk.msra.mxu0 %vm701_vm1, %v1502_v56  ;;  %4636 = vmatprep.mubr.msk.f32.mxu1 %vm1060_vm2, %v1138_v40 }
 0x4ee   : > { %4667 = vmatprep.subr.msk.mxu0 %vm701_vm1, %v1686_v63  ;;  %v4990_v43 = vpop.eup %4989  ;;  %4637 = vmatmul.mubr.msk.f32.vlgmr.msra.gmra.mxu1 %vm1060_vm2, %v1140_v41 }
 0x4ef   : > { %4647 = vmatpush3.msra.mxu1 %v5714_v51  ;;  %v1146_v28 = vmul.f32 %v4990_v43, %v5723_v54  ;;  %v666_v54 = vld [vmem:[#allocation5 + $0x18] sm:$0xff] }
 0x4f0   : > { %4658 = vmatmul.mubr.msk.f32.vlgmr.msra.gmra.mxu0 %vm701_vm1, %v1500_v7  ;;  %4648 = vmatprep.subr.mxu1 %v1411_v58  ;;  %v1771_v47 = vpop.permute.xlu0 %1770  ;;  %v682_v7 = vld [vmem:[#allocation5 + $0x98] sm:$0xff] }
 0x4f1   : > { %4668 = vmatpush3.xpose.msk.msra.mxu0 %vm701_vm1, %v1686_v63  ;;  %4649 = vmatpush3.msra.mxu1 %v1411_v58 }
 0x4f2   : > { %4671 = vmatprep.mubr.msk.f32.mxu0 %vm701_vm1, %v1680_v21  ;;  %4650 = vmatprep.mubr.msk.f32.mxu1 %vm1060_vm2, %v1146_v28 }
 0x4f3   : > { %4660 = vmatprep.subr.msk.mxu1 %vm701_vm1, %v5743_v62  ;;  %4669 = vmatprep.subr.msk.mxu0 %vm701_vm1, %v1684_v36 }
 0x4f4   : > { %4651 = vmatmul.mubr.msk.f32.vlgmr.msra.gmra.mxu1 %vm1060_vm2, %v1148_v45 }
 0x4f5   : > { %4661 = vmatpush3.xpose.msk.msra.mxu1 %vm701_vm1, %v5743_v62  ;;  %4664 = vmatprep.mubr.msk.f32.mxu1 %vm701_vm1, %v5747_v4 }
 0x4f6   : > { %4662 = vmatprep.subr.msk.mxu1 %vm701_vm1, %v5745_v1  ;;  %4670 = vmatpush3.xpose.msk.msra.mxu0 %vm701_vm1, %v1684_v36  ;;  %v689_v36 = vld [vmem:[#allocation5 + $0xd0] sm:$0xff] }
 0x4f9   : > { %4663 = vmatpush3.xpose.msk.msra.mxu1 %vm701_vm1, %v5745_v1  ;;  %4672 = vmatmul.mubr.msk.f32.vlgmr.msra.gmra.mxu0 %vm701_vm1, %v1682_v46 }
 0x4fa   : > { %4674 = vmatprep.subr.msk.mxu1 %vm701_vm1, %v1777_v20 }
 0x4fc   : > { %4665 = vmatmul.mubr.msk.f32.vlgmr.msra.gmra.mxu1 %vm701_vm1, %v1591_v44 }
 0x4fd   : > { %4675 = vmatpush3.xpose.msk.msra.mxu1 %vm701_vm1, %v1777_v20  ;;  %4678 = vmatprep.mubr.msk.f32.mxu1 %vm701_vm1, %v1771_v47 }
 0x4fe   : > { %4676 = vmatprep.subr.msk.mxu1 %vm701_vm1, %v1775_v50 }
 0x501   : > { %4677 = vmatpush3.xpose.msk.msra.mxu1 %vm701_vm1, %v1775_v50 }
 0x504   : > { %4679 = vmatmul.mubr.msk.f32.vlgmr.msra.gmra.mxu1 %vm701_vm1, %v1773_v29 }
 0x59b   : > { %v5795_v51 = vpop.f32.mrf.mxu0 }
 0x59d   : > { %v5797_v38 = vpop.f32.mrf.mxu0 }
 0x5a8   : > { %v5799_v52 = vpop.f32.mrf.mxu0 }
 0x5aa   : > { %v5801_v53 = vpop.f32.mrf.mxu0 }
 0x5ae   : > { %v5803_v55 = vpop.f32.mrf.mxu1 }
 0x5b0   : > { %v4659_v39 = vpop.f32.mrf.mxu0  ;;  %v5805_v58 = vpop.f32.mrf.mxu1 }
 0x5b1   : > { %v1585_v56 = vadd.f32 %v4659_v39, %v666_v54 }
 0x5b2   : > { %v1579_v49 = vpop.f32.mrf.mxu0 }
 0x5b3   : > { %v1580_v62 = vadd.f32 %v1579_v49, %v665_v48  ;;  %v1864_v63 = vsel %vm1060_vm2, %v1585_v56, -inf }
 0x5b4   : > { %1865 = vmax.xlane.f32.xlu1 %v1864_v63  ;;  %v5809_v4 = vpop.f32.mrf.mxu1 }
 0x5b5   : > { %v1861_v1 = vsel %vm1060_vm2, %v1580_v62, -inf }
 0x5b6   : > { %1862 = vmax.xlane.f32.xlu0 %v1861_v1  ;;  %v5811_v11 = vpop.f32.mrf.mxu1 }
 0x5b9   : > { %v4673_v9 = vpop.f32.mrf.mxu0 }
 0x5ba   : > { %v1767_v13 = vadd.f32 %v4673_v9, %v682_v7 }
 0x5bb   : > { %v1761_v16 = vpop.f32.mrf.mxu0 }
 0x5bc   : > { %v4666_v17 = vpop.f32.mrf.mxu1  ;;  %v1762_v23 = vadd.f32 %v1761_v16, %v681_v10  ;;  %v1876_v26 = vsel %vm1060_vm2, %v1767_v13, -inf }
 0x5bd   : > { %1877 = vmax.xlane.f32.xlu1 %v1876_v26  ;;  %v1676_v27 = vadd.f32 %v4666_v17, %v674_v15 }
 0x5be   : > { %v1873_v30 = vsel %vm1060_vm2, %v1762_v23, -inf  ;;  %v1670_v32 = vpop.f32.mrf.mxu1 }
 0x5bf   : > { %1874 = vmax.xlane.f32.xlu0 %v1873_v30  ;;  %v5815_v31 = vadd.f32 %v1670_v32, %v673_v33  ;;  %v1870_v25 = vsel %vm1060_vm2, %v1676_v27, -inf }
 0x5c1   : > { %v1867_v40 = vsel %vm1060_vm2, %v5815_v31, -inf }
 0x5c3   : > { %1871 = vmax.xlane.f32.xlu0 %v1870_v25 }
 0x5c4   : > { %v4680_v35 = vpop.f32.mrf.mxu1 }
 0x5c5   : > { %v1858_v37 = vadd.f32 %v4680_v35, %v690_v34 }
 0x5c6   : > { %v1852_v20 = vpop.f32.mrf.mxu1 }
 0x5c7   : > { %v1853_v41 = vadd.f32 %v1852_v20, %v689_v36  ;;  %1868 = vmax.xlane.f32.xlu0 %v1867_v40  ;;  %v1882_v42 = vsel %vm1060_vm2, %v1858_v37, -inf }
 0x5c8   : > { %1883 = vmax.xlane.f32.xlu1 %v1882_v42 }
 0x5c9   : > { %v1879_v43 = vsel %vm1060_vm2, %v1853_v41, -inf }
 0x5cb   : > { %1880 = vmax.xlane.f32.xlu0 %v1879_v43 }
 0x5d9   : > { %1949 = vrot.lane.b32.xlu1 %v5574_v59, %s5277_s14 }
 0x5dd   : > { %2038 = vrot.lane.b32.xlu1 %v5581_v61, %s5277_s14 }
 0x5e1   : > { %2125 = vrot.lane.b32.xlu1 %v5585_v0, %s5277_s14  ;;  %1951 = vrot.lane.b32.xlu0 %v5572_v57, %s5277_s14 }
 0x5e5   : > { %2123 = vrot.lane.b32.xlu1 %v5590_v3, %s5277_s14  ;;  %2036 = vrot.lane.b32.xlu0 %v5588_v2, %s5277_s14 }
 0x5e9   : > { %2303 = vrot.lane.b32.xlu1 %v5572_v57, %s5278_s20  ;;  %2212 = vrot.lane.b32.xlu0 %v5593_v5, %s5277_s14 }
 0x5ed   : > { %2301 = vrot.lane.b32.xlu1 %v5574_v59, %s5278_s20  ;;  %2210 = vrot.lane.b32.xlu0 %v5603_v8, %s5277_s14  ;;  %s4181_s14 = sshll.u32 %s368_s23, 4  ;;  %s6275_s14 = int_to_ptr.vmem [resolvable:$true] %s4181_s14 }
 0x5f1   : > { %2297 = vrot.lane.b32.xlu1 %v5579_v60, %s5279_s21  ;;  %2394 = vrot.lane.b32.xlu0 %v5581_v61, %s5278_s20 }
 0x5f5   : > { %2485 = vrot.lane.b32.xlu1 %v5585_v0, %s5278_s20  ;;  %2392 = vrot.lane.b32.xlu0 %v5588_v2, %s5278_s20 }
 0x5f9   : > { %2388 = vrot.lane.b32.xlu1 %v5615_v14, %s5279_s21  ;;  %2299 = vrot.lane.b32.xlu0 %v5612_v12, %s5279_s21 }
 0x63d   : > { %v1866_v44 = vpop.xlane.xlu1 %1865 }
 0x63e   : > { %v1886_v28 = vsub.f32 %v1585_v56, %v1866_v44 }
 0x63f   : > { %v1863_v21 = vpop.xlane.xlu0 %1862 }
 0x640   : > { %v1895_v45 = vmul.f32 1.442695, %v1886_v28  ;;  %v1885_v46 = vsub.f32 %v1580_v62, %v1863_v21 }
 0x642   : > { %4991 = vpow2.f32 %v1895_v45  ;;  %v1893_v47 = vmul.f32 1.442695, %v1885_v46 }
 0x644   : > { %4993 = vpow2.f32 %v1893_v47 }
 0x646   : > { %v1878_v50 = vpop.xlane.xlu1 %1877 }
 0x647   : > { %v1890_v29 = vsub.f32 %v1767_v13, %v1878_v50 }
 0x648   : > { %v1875_v54 = vpop.xlane.xlu0 %1874 }
 0x649   : > { %v1903_v39 = vmul.f32 1.442695, %v1890_v29  ;;  %v1889_v48 = vsub.f32 %v1762_v23, %v1875_v54 }
 0x64b   : > { %4995 = vpow2.f32 %v1903_v39  ;;  %v1901_v49 = vmul.f32 1.442695, %v1889_v48 }
 0x64c   : > { %v1872_v63 = vpop.xlane.xlu0 %1871 }
 0x64d   : > { %4997 = vpow2.f32 %v1901_v49  ;;  %v1888_v1 = vsub.f32 %v1676_v27, %v1872_v63 }
 0x64f   : > { %v5846_v7 = vpop.eup %4991  ;;  %v1899_v9 = vmul.f32 1.442695, %v1888_v1 }
 0x650   : > { %v1869_v56 = vpop.xlane.xlu0 %1868  ;;  %v1912_v62 = vsel %vm1060_vm2, %v5846_v7, 0.0 }
 0x651   : > { %v5850_v10 = vpop.eup %4993  ;;  %4999 = vpow2.f32 %v1899_v9  ;;  %v1884_v15 = vpop.xlane.xlu1 %1883  ;;  %v1887_v13 = vsub.f32 %v5815_v31, %v1869_v56  ;;  %1913 = vadd.xlane.f32.xlu1 %v1912_v62 }
 0x652   : > { %v1892_v16 = vsub.f32 %v1858_v37, %v1884_v15  ;;  %v1909_v17 = vsel %vm1060_vm2, %v5850_v10, 0.0 }
 0x653   : > { %v1897_v23 = vmul.f32 1.442695, %v1887_v13  ;;  %1910 = vadd.xlane.f32.xlu0 %v1909_v17 }
 0x654   : > { %v1907_v26 = vmul.f32 1.442695, %v1892_v16  ;;  %v1881_v27 = vpop.xlane.xlu0 %1880 }
 0x655   : > { %5001 = vpow2.f32 %v1897_v23  ;;  %v1950_v30 = vpop.permute.xlu1 %1949  ;;  %v1891_v32 = vsub.f32 %v1853_v41, %v1881_v27 }
 0x656   : > { %5003 = vpow2.f32 %v1907_v26 }
 0x657   : > { %v1905_v33 = vmul.f32 1.442695, %v1891_v32 }
 0x658   : > { %v5855_v25 = vpop.eup %4995  ;;  %v1952_v34 = vpop.permute.xlu0 %1951 }
 0x659   : > { %5005 = vpow2.f32 %v1905_v33  ;;  %v2039_v35 = vpop.permute.xlu1 %2038  ;;  %4681 = vmatprep.subr.mxu0 %v1952_v34  ;;  %v1924_v31 = vsel %vm1060_vm2, %v5855_v25, 0.0 }
 0x65a   : > { %v5859_v36 = vpop.eup %4997  ;;  %4688 = vmatprep.subr.mxu1 %v2039_v35  ;;  %1925 = vadd.xlane.f32.xlu1 %v1924_v31 }
 0x65b   : > { %4682 = vmatpush3.msra.mxu0 %v1952_v34  ;;  %4689 = vmatpush3.msra.mxu1 %v2039_v35  ;;  %v1921_v40 = vsel %vm1060_vm2, %v5859_v36, 0.0 }
 0x65c   : > { %4683 = vmatprep.subr.mxu0 %v1950_v30  ;;  %v2037_v37 = vpop.permute.xlu0 %2036 }
 0x65d   : > { %v2126_v20 = vpop.permute.xlu1 %2125  ;;  %4684 = vmatpush3.msra.mxu0 %v1950_v30  ;;  %4690 = vmatprep.subr.mxu1 %v2037_v37 }
 0x65e   : > { %v5863_v41 = vpop.eup %4999  ;;  %4695 = vmatprep.subr.mxu0 %v2126_v20  ;;  %1922 = vadd.xlane.f32.xlu1 %v1921_v40 }
 0x65f   : > { %4691 = vmatpush3.msra.mxu1 %v2037_v37  ;;  %v1918_v42 = vsel %vm1060_vm2, %v5863_v41, 0.0 }
 0x660   : > { %1919 = vadd.xlane.f32.xlu0 %v1918_v42  ;;  %v5867_v43 = vpop.permute.xlu0 %2212 }
 0x661   : > { %4702 = vmatprep.subr.mxu1 %v5867_v43  ;;  %v2124_v50 = vpop.permute.xlu1 %2123 }
 0x662   : > { %v5870_v44 = vpop.eup %5001 }
 0x663   : > { %v5872_v28 = vpop.eup %5003  ;;  %v1915_v21 = vsel %vm1060_vm2, %v5870_v44, 0.0 }
 0x664   : > { %v1930_v45 = vsel %vm1060_vm2, %v5872_v28, 0.0  ;;  %1916 = vadd.xlane.f32.xlu0 %v1915_v21  ;;  %v2211_v39 = vpop.permute.xlu0 %2210 }
 0x665   : > { %1931 = vadd.xlane.f32.xlu1 %v1930_v45  ;;  %v2304_v29 = vpop.permute.xlu1 %2303 }
 0x666   : > { %v5878_v46 = vpop.eup %5005 }
 0x667   : > { %v1927_v47 = vsel %vm1060_vm2, %v5878_v46, 0.0 }
 0x668   : > { %1928 = vadd.xlane.f32.xlu0 %v1927_v47  ;;  %v5898_v49 = vpop.permute.xlu0 %2394 }
 0x669   : > { %v2302_v54 = vpop.permute.xlu1 %2301 }
 0x66c   : > { %v5900_v1 = vpop.permute.xlu0 %2392 }
 0x66d   : > { %v2298_v48 = vpop.permute.xlu1 %2297 }
 0x670   : > { %v2300_v56 = vpop.permute.xlu0 %2299 }
 0x671   : > { %v2486_v63 = vpop.permute.xlu1 %2485 }
 0x675   : > { %v5902_v9 = vpop.permute.xlu1 %2388 }
 0x676   : > { %2576 = vrot.lane.b32.xlu1 %v5593_v5, %s5278_s20 }
 0x67a   : > { %2479 = vrot.lane.b32.xlu1 %v5597_v6, %s5279_s21 }
 0x67e   : > { %2574 = vrot.lane.b32.xlu1 %v5603_v8, %s5278_s20  ;;  %2483 = vrot.lane.b32.xlu0 %v5590_v3, %s5278_s20 }
 0x682   : > { %2572 = vrot.lane.b32.xlu1 %v5648_v24, %s5279_s21  ;;  %2390 = vrot.lane.b32.xlu0 %v5629_v18, %s5279_s21 }
 0x686   : > { %2481 = vrot.lane.b32.xlu0 %v5638_v22, %s5279_s21 }
 0x68a   : > { %2570 = vrot.lane.b32.xlu0 %v5633_v19, %s5279_s21 }
 0x6da   : > { %v1914_v62 = vpop.xlane.xlu1 %1913 }
 0x6db   : > { %5007 = vrcp.f32 %v1914_v62 }
 0x6dc   : > { %v1911_v15 = vpop.xlane.xlu0 %1910 }
 0x6dd   : > { %5009 = vrcp.f32 %v1911_v15 }
 0x6e3   : > { %v1926_v13 = vpop.xlane.xlu1 %1925 }
 0x6e4   : > { %5011 = vrcp.f32 %v1926_v13 }
 0x6e7   : > { %v1923_v16 = vpop.xlane.xlu1 %1922 }
 0x6e8   : > { %5013 = vrcp.f32 %v1923_v16  ;;  %v5008_v17 = vpop.eup %5007 }
 0x6e9   : > { %v1920_v23 = vpop.xlane.xlu0 %1919  ;;  %v1936_v30 = vmul.f32 %v5008_v17, %v5846_v7 }
 0x6ea   : > { %v5010_v26 = vpop.eup %5009  ;;  %5015 = vrcp.f32 %v1920_v23 }
 0x6eb   : > { %v1934_v27 = vmul.f32 %v5010_v26, %v5850_v10 }
 0x6ed   : > { %v1917_v32 = vpop.xlane.xlu0 %1916  ;;  %4685 = vmatprep.mubr.msk.f32.mxu0 %vm1060_vm2, %v1934_v27  ;;  %v684_v27 = vld [vmem:[#allocation5 + $0xa8] sm:$0xff] }
 0x6ee   : > { %5017 = vrcp.f32 %v1917_v32  ;;  %4686 = vmatmul.mubr.msk.f32.vlgmr.msra.gmra.mxu0 %vm1060_vm2, %v1936_v30  ;;  %v1932_v33 = vpop.xlane.xlu1 %1931  ;;  %v683_v32 = vld [vmem:[#allocation5 + $0xa0] sm:$0xff] }
 0x6ef   : > { %4696 = vmatpush3.msra.mxu0 %v2126_v20 }
 0x6f0   : > { %4697 = vmatprep.subr.mxu0 %v2124_v50 }
 0x6f1   : > { %4698 = vmatpush3.msra.mxu0 %v2124_v50  ;;  %v1929_v34 = vpop.xlane.xlu0 %1928  ;;  %v5012_v35 = vpop.eup %5011 }
 0x6f2   : > { %5019 = vrcp.f32 %v1929_v34  ;;  %4709 = vmatprep.subr.msk.mxu0 %vm701_vm1, %v2304_v29  ;;  %v1944_v31 = vmul.f32 %v5012_v35, %v5855_v25  ;;  %v2577_v42 = vpop.permute.xlu1 %2576  ;;  %v676_v35 = vld [vmem:[#allocation5 + $0x68] sm:$0xff] }
 0x6f3   : > { %5021 = vrcp.f32 %v1932_v33 }
 0x6f5   : > { %v5014_v10 = vpop.eup %5013  ;;  %v2484_v40 = vpop.permute.xlu0 %2483 }
 0x6f6   : > { %v1942_v7 = vmul.f32 %v5014_v10, %v5859_v36 }
 0x6f7   : > { %v5016_v37 = vpop.eup %5015 }
 0x6f8   : > { %4699 = vmatprep.mubr.msk.f32.mxu0 %vm1060_vm2, %v1942_v7  ;;  %v1940_v36 = vmul.f32 %v5016_v37, %v5863_v41 }
 0x6f9   : > { %4700 = vmatmul.mubr.msk.f32.vlgmr.msra.gmra.mxu0 %vm1060_vm2, %v1944_v31  ;;  %v2391_v50 = vpop.permute.xlu0 %2390 }
 0x6fa   : > { %4710 = vmatpush3.xpose.msk.msra.mxu0 %vm701_vm1, %v2304_v29  ;;  %4713 = vmatprep.mubr.msk.f32.mxu0 %vm701_vm1, %v2298_v48 }
 0x6fb   : > { %v5018_v20 = vpop.eup %5017  ;;  %4711 = vmatprep.subr.msk.mxu0 %vm701_vm1, %v2302_v54 }
 0x6fc   : > { %v1938_v21 = vmul.f32 %v5018_v20, %v5870_v44  ;;  %v2480_v44 = vpop.permute.xlu1 %2479 }
 0x6fe   : > { %4712 = vmatpush3.xpose.msk.msra.mxu0 %vm701_vm1, %v2302_v54  ;;  %4692 = vmatprep.mubr.msk.f32.mxu1 %vm1060_vm2, %v1938_v21  ;;  %v675_v21 = vld [vmem:[#allocation5 + $0x60] sm:$0xff] }
 0x6ff   : > { %v5020_v25 = vpop.eup %5019  ;;  %4723 = vmatprep.subr.msk.mxu0 %vm701_vm1, %v2486_v63  ;;  %4693 = vmatmul.mubr.msk.f32.vlgmr.msra.gmra.mxu1 %vm1060_vm2, %v1940_v36 }
 0x700   : > { %v5022_v45 = vpop.eup %5021  ;;  %4703 = vmatpush3.msra.mxu1 %v5867_v43  ;;  %v1946_v47 = vmul.f32 %v5020_v25, %v5878_v46  ;;  %v2482_v43 = vpop.permute.xlu0 %2481 }
 0x701   : > { %4704 = vmatprep.subr.mxu1 %v2211_v39  ;;  %4714 = vmatmul.mubr.msk.f32.vlgmr.msra.gmra.mxu0 %vm701_vm1, %v2300_v56  ;;  %v1948_v41 = vmul.f32 %v5022_v45, %v5872_v28  ;;  %v2575_v46 = vpop.permute.xlu1 %2574  ;;  %v667_v56 = vld [vmem:[#allocation5 + $0x20] sm:$0xff]  ;;  %v692_v45 = vld [vmem:[#allocation5 + $0xe8] sm:$0xff] }
 0x702   : > { %4705 = vmatpush3.msra.mxu1 %v2211_v39  ;;  %4724 = vmatpush3.xpose.msk.msra.mxu0 %vm701_vm1, %v2486_v63 }
 0x703   : > { %4727 = vmatprep.mubr.msk.f32.mxu0 %vm701_vm1, %v2480_v44  ;;  %4706 = vmatprep.mubr.msk.f32.mxu1 %vm1060_vm2, %v1946_v47 }
 0x704   : > { %4716 = vmatprep.subr.msk.mxu1 %vm701_vm1, %v5898_v49  ;;  %4725 = vmatprep.subr.msk.mxu0 %vm701_vm1, %v2484_v40  ;;  %v2571_v28 = vpop.permute.xlu0 %2570 }
 0x705   : > { %4707 = vmatmul.mubr.msk.f32.vlgmr.msra.gmra.mxu1 %vm1060_vm2, %v1948_v41  ;;  %v2573_v29 = vpop.permute.xlu1 %2572 }
 0x706   : > { %4717 = vmatpush3.xpose.msk.msra.mxu1 %vm701_vm1, %v5898_v49  ;;  %4720 = vmatprep.mubr.msk.f32.mxu1 %vm701_vm1, %v5902_v9 }
 0x707   : > { %4718 = vmatprep.subr.msk.mxu1 %vm701_vm1, %v5900_v1  ;;  %4726 = vmatpush3.xpose.msk.msra.mxu0 %vm701_vm1, %v2484_v40 }
 0x70a   : > { %4719 = vmatpush3.xpose.msk.msra.mxu1 %vm701_vm1, %v5900_v1  ;;  %4728 = vmatmul.mubr.msk.f32.vlgmr.msra.gmra.mxu0 %vm701_vm1, %v2482_v43  ;;  %v668_v1 = vld [vmem:[#allocation5 + $0x28] sm:$0xff] }
 0x70b   : > { %4730 = vmatprep.subr.msk.mxu1 %vm701_vm1, %v2577_v42 }
 0x70d   : > { %4721 = vmatmul.mubr.msk.f32.vlgmr.msra.gmra.mxu1 %vm701_vm1, %v2391_v50  ;;  %v691_v50 = vld [vmem:[#allocation5 + $0xe0] sm:$0xff] }
 0x70e   : > { %4731 = vmatpush3.xpose.msk.msra.mxu1 %vm701_vm1, %v2577_v42  ;;  %4734 = vmatprep.mubr.msk.f32.mxu1 %vm701_vm1, %v2571_v28 }
 0x70f   : > { %4732 = vmatprep.subr.msk.mxu1 %vm701_vm1, %v2575_v46 }
 0x712   : > { %4733 = vmatpush3.xpose.msk.msra.mxu1 %vm701_vm1, %v2575_v46 }
 0x715   : > { %4735 = vmatmul.mubr.msk.f32.vlgmr.msra.gmra.mxu1 %vm701_vm1, %v2573_v29 }
 0x7ae   : > { %v5950_v54 = vpop.f32.mrf.mxu0 }
 0x7b0   : > { %v5952_v39 = vpop.f32.mrf.mxu0 }
 0x7b9   : > { %v5954_v48 = vpop.f32.mrf.mxu0 }
 0x7bb   : > { %v5956_v49 = vpop.f32.mrf.mxu0 }
 0x7bf   : > { %v5958_v63 = vpop.f32.mrf.mxu1 }
 0x7c1   : > { %v4715_v9 = vpop.f32.mrf.mxu0  ;;  %v5960_v15 = vpop.f32.mrf.mxu1 }
 0x7c2   : > { %v2385_v62 = vadd.f32 %v4715_v9, %v668_v1 }
 0x7c3   : > { %v2379_v13 = vpop.f32.mrf.mxu0 }
 0x7c4   : > { %v2380_v16 = vadd.f32 %v2379_v13, %v667_v56  ;;  %v2664_v17 = vsel %vm1060_vm2, %v2385_v62, -inf }
 0x7c5   : > { %2665 = vmax.xlane.f32.xlu1 %v2664_v17  ;;  %v5964_v26 = vpop.f32.mrf.mxu1 }
 0x7c6   : > { %v2661_v23 = vsel %vm1060_vm2, %v2380_v16, -inf }
 0x7c7   : > { %2662 = vmax.xlane.f32.xlu0 %v2661_v23  ;;  %v5966_v33 = vpop.f32.mrf.mxu1 }
 0x7ca   : > { %v4729_v30 = vpop.f32.mrf.mxu0 }
 0x7cb   : > { %v2567_v34 = vadd.f32 %v4729_v30, %v684_v27 }
 0x7cc   : > { %v2561_v10 = vpop.f32.mrf.mxu0 }
 0x7cd   : > { %v4722_v7 = vpop.f32.mrf.mxu1  ;;  %v2562_v31 = vadd.f32 %v2561_v10, %v683_v32  ;;  %v2676_v37 = vsel %vm1060_vm2, %v2567_v34, -inf }
 0x7ce   : > { %2677 = vmax.xlane.f32.xlu1 %v2676_v37  ;;  %v2476_v20 = vadd.f32 %v4722_v7, %v676_v35 }
 0x7cf   : > { %v2673_v40 = vsel %vm1060_vm2, %v2562_v31, -inf  ;;  %v2470_v42 = vpop.f32.mrf.mxu1 }
 0x7d0   : > { %2674 = vmax.xlane.f32.xlu0 %v2673_v40  ;;  %v5970_v36 = vadd.f32 %v2470_v42, %v675_v21  ;;  %v2670_v25 = vsel %vm1060_vm2, %v2476_v20, -inf }
 0x7d2   : > { %v2667_v43 = vsel %vm1060_vm2, %v5970_v36, -inf }
 0x7d4   : > { %2671 = vmax.xlane.f32.xlu0 %v2670_v25 }
 0x7d5   : > { %v4736_v47 = vpop.f32.mrf.mxu1 }
 0x7d6   : > { %v2658_v44 = vadd.f32 %v4736_v47, %v692_v45 }
 0x7d7   : > { %v2652_v41 = vpop.f32.mrf.mxu1 }
 0x7d8   : > { %v2653_v28 = vadd.f32 %v2652_v41, %v691_v50  ;;  %2668 = vmax.xlane.f32.xlu0 %v2667_v43  ;;  %v2682_v46 = vsel %vm1060_vm2, %v2658_v44, -inf }
 0x7d9   : > { %2683 = vmax.xlane.f32.xlu1 %v2682_v46 }
 0x7da   : > { %v2679_v29 = vsel %vm1060_vm2, %v2653_v28, -inf }
 0x7dc   : > { %2680 = vmax.xlane.f32.xlu0 %v2679_v29 }
 0x7ea   : > { %2749 = vrot.lane.b32.xlu1 %v5574_v59, %s5280_s11 }
 0x7ee   : > { %2838 = vrot.lane.b32.xlu1 %v5581_v61, %s5280_s11 }
 0x7f2   : > { %2925 = vrot.lane.b32.xlu1 %v5585_v0, %s5280_s11  ;;  %2751 = vrot.lane.b32.xlu0 %v5572_v57, %s5280_s11 }
 0x7f6   : > { %2923 = vrot.lane.b32.xlu1 %v5590_v3, %s5280_s11  ;;  %2836 = vrot.lane.b32.xlu0 %v5588_v2, %s5280_s11 }
 0x7fa   : > { %3103 = vrot.lane.b32.xlu1 %v5572_v57, %s5281_s13  ;;  %3012 = vrot.lane.b32.xlu0 %v5593_v5, %s5280_s11 }
 0x7fe   : > { %3101 = vrot.lane.b32.xlu1 %v5574_v59, %s5281_s13  ;;  %3010 = vrot.lane.b32.xlu0 %v5603_v8, %s5280_s11  ;;  %s6272_s11 = scalar_lea.hbm %s6328_s8, %s4424_s4 }
 0x802   : > { %3097 = vrot.lane.b32.xlu1 %v5579_v60, %s5282_s22  ;;  %3194 = vrot.lane.b32.xlu0 %v5581_v61, %s5281_s13 }
 0x806   : > { %3192 = vrot.lane.b32.xlu1 %v5588_v2, %s5281_s13  ;;  %3099 = vrot.lane.b32.xlu0 %v5612_v12, %s5282_s22 }
 0x80a   : > { %3188 = vrot.lane.b32.xlu1 %v5615_v14, %s5282_s22  ;;  %3285 = vrot.lane.b32.xlu0 %v5585_v0, %s5281_s13 }
 0x84e   : > { %v2666_v1 = vpop.xlane.xlu1 %2665 }
 0x84f   : > { %v2686_v9 = vsub.f32 %v2385_v62, %v2666_v1 }
 0x850   : > { %v2663_v56 = vpop.xlane.xlu0 %2662 }
 0x851   : > { %v2695_v13 = vmul.f32 1.442695, %v2686_v9  ;;  %v2685_v60 = vsub.f32 %v2380_v16, %v2663_v56 }
 0x853   : > { %5023 = vpow2.f32 %v2695_v13  ;;  %v2693_v17 = vmul.f32 1.442695, %v2685_v60 }
 0x855   : > { %5025 = vpow2.f32 %v2693_v17 }
 0x857   : > { %v2678_v23 = vpop.xlane.xlu1 %2677 }
 0x858   : > { %v2690_v27 = vsub.f32 %v2567_v34, %v2678_v23 }
 0x859   : > { %v2675_v30 = vpop.xlane.xlu0 %2674 }
 0x85a   : > { %v2703_v32 = vmul.f32 1.442695, %v2690_v27  ;;  %v2689_v35 = vsub.f32 %v2562_v31, %v2675_v30 }
 0x85c   : > { %5027 = vpow2.f32 %v2703_v32  ;;  %v2701_v12 = vmul.f32 1.442695, %v2689_v35 }
 0x85d   : > { %v2672_v10 = vpop.xlane.xlu0 %2671 }
 0x85e   : > { %5029 = vpow2.f32 %v2701_v12  ;;  %v2688_v14 = vsub.f32 %v2476_v20, %v2672_v10 }
 0x860   : > { %v6001_v7 = vpop.eup %5023  ;;  %v2699_v37 = vmul.f32 1.442695, %v2688_v14 }
 0x861   : > { %v2669_v62 = vpop.xlane.xlu0 %2668  ;;  %v2712_v16 = vsel %vm1060_vm2, %v6001_v7, 0.0 }
 0x862   : > { %v6005_v40 = vpop.eup %5025  ;;  %5031 = vpow2.f32 %v2699_v37  ;;  %v2684_v42 = vpop.xlane.xlu1 %2683  ;;  %v2687_v34 = vsub.f32 %v5970_v36, %v2669_v62  ;;  %2713 = vadd.xlane.f32.xlu1 %v2712_v16 }
 0x863   : > { %v2692_v31 = vsub.f32 %v2658_v44, %v2684_v42  ;;  %v2709_v21 = vsel %vm1060_vm2, %v6005_v40, 0.0 }
 0x864   : > { %v2697_v25 = vmul.f32 1.442695, %v2687_v34  ;;  %2710 = vadd.xlane.f32.xlu0 %v2709_v21 }
 0x865   : > { %v2707_v20 = vmul.f32 1.442695, %v2692_v31  ;;  %v2681_v45 = vpop.xlane.xlu0 %2680 }
 0x866   : > { %5033 = vpow2.f32 %v2697_v25  ;;  %v2750_v47 = vpop.permute.xlu1 %2749  ;;  %v2691_v50 = vsub.f32 %v2653_v28, %v2681_v45 }
 0x867   : > { %5035 = vpow2.f32 %v2707_v20 }
 0x868   : > { %v2705_v41 = vmul.f32 1.442695, %v2691_v50 }
 0x869   : > { %v6010_v43 = vpop.eup %5027  ;;  %v2752_v46 = vpop.permute.xlu0 %2751 }
 0x86a   : > { %5037 = vpow2.f32 %v2705_v41  ;;  %v2839_v29 = vpop.permute.xlu1 %2838  ;;  %4737 = vmatprep.subr.mxu0 %v2752_v46  ;;  %v2724_v36 = vsel %vm1060_vm2, %v6010_v43, 0.0 }
 0x86b   : > { %v6014_v44 = vpop.eup %5029  ;;  %4744 = vmatprep.subr.mxu1 %v2839_v29  ;;  %2725 = vadd.xlane.f32.xlu1 %v2724_v36 }
 0x86c   : > { %4738 = vmatpush3.msra.mxu0 %v2752_v46  ;;  %4745 = vmatpush3.msra.mxu1 %v2839_v29  ;;  %v2721_v9 = vsel %vm1060_vm2, %v6014_v44, 0.0 }
 0x86d   : > { %4739 = vmatprep.subr.mxu0 %v2750_v47  ;;  %v2837_v1 = vpop.permute.xlu0 %2836 }
 0x86e   : > { %v2926_v28 = vpop.permute.xlu1 %2925  ;;  %4740 = vmatpush3.msra.mxu0 %v2750_v47  ;;  %4746 = vmatprep.subr.mxu1 %v2837_v1 }
 0x86f   : > { %v6018_v56 = vpop.eup %5031  ;;  %4751 = vmatprep.subr.mxu0 %v2926_v28  ;;  %2722 = vadd.xlane.f32.xlu1 %v2721_v9 }
 0x870   : > { %4747 = vmatpush3.msra.mxu1 %v2837_v1  ;;  %v2718_v13 = vsel %vm1060_vm2, %v6018_v56, 0.0 }
 0x871   : > { %2719 = vadd.xlane.f32.xlu0 %v2718_v13  ;;  %v6022_v60 = vpop.permute.xlu0 %3012 }
 0x872   : > { %4758 = vmatprep.subr.mxu1 %v6022_v60  ;;  %v2924_v12 = vpop.permute.xlu1 %2923 }
 0x873   : > { %v6025_v17 = vpop.eup %5033 }
 0x874   : > { %v6027_v23 = vpop.eup %5035  ;;  %v2715_v27 = vsel %vm1060_vm2, %v6025_v17, 0.0 }
 0x875   : > { %v2730_v30 = vsel %vm1060_vm2, %v6027_v23, 0.0  ;;  %2716 = vadd.xlane.f32.xlu0 %v2715_v27  ;;  %v3011_v14 = vpop.permute.xlu0 %3010 }
 0x876   : > { %2731 = vadd.xlane.f32.xlu1 %v2730_v30 }
 0x877   : > { %v6033_v32 = vpop.eup %5037 }
 0x878   : > { %v2727_v35 = vsel %vm1060_vm2, %v6033_v32, 0.0 }
 0x879   : > { %2728 = vadd.xlane.f32.xlu0 %v2727_v35  ;;  %v6053_v62 = vpop.permute.xlu0 %3194 }
 0x87d   : > { %v3100_v16 = vpop.permute.xlu0 %3099 }
 0x881   : > { %v3286_v42 = vpop.permute.xlu0 %3285 }
 0x887   : > { %3283 = vrot.lane.b32.xlu1 %v5590_v3, %s5281_s13 }
 0x88b   : > { %3279 = vrot.lane.b32.xlu1 %v5597_v6, %s5282_s22  ;;  %v3104_v6 = vpop.permute.xlu1 %3103 }
 0x88f   : > { %3374 = vrot.lane.b32.xlu1 %v5603_v8, %s5281_s13  ;;  %3190 = vrot.lane.b32.xlu0 %v5629_v18, %s5282_s22  ;;  %v3102_v10 = vpop.permute.xlu1 %3101 }
 0x893   : > { %3372 = vrot.lane.b32.xlu1 %v5648_v24, %s5282_s22  ;;  %3376 = vrot.lane.b32.xlu0 %v5593_v5, %s5281_s13  ;;  %v3098_v37 = vpop.permute.xlu1 %3097  ;;  %s5193_s13 = scalar_lea.vmem %s6275_s14, 1024 }
 0x894   : > { %p5194_p7 = scmp.ne.s32.totalorder %s6275_s14, %s5193_s13 }
 0x896   : > { %p5195_p12 = pnand %p5194_p7, %p6353_p1 }
 0x897   : > { %3281 = vrot.lane.b32.xlu0 %v5638_v22, %s5282_s22  ;;  %v6055_v18 = vpop.permute.xlu1 %3192 }
 0x898   : > { %p5196_p9 = pneg %p5195_p12 }
 0x89b   : > { %3370 = vrot.lane.b32.xlu0 %v5633_v19, %s5282_s22  ;;  %v6057_v24 = vpop.permute.xlu1 %3188  ;;  %s5287_s22 = smov [#allocation10]  }
 0x8eb   : > { %v2714_v34 = vpop.xlane.xlu1 %2713 }
 0x8ec   : > { %5039 = vrcp.f32 %v2714_v34 }
 0x8ed   : > { %v2711_v31 = vpop.xlane.xlu0 %2710 }
 0x8ee   : > { %5041 = vrcp.f32 %v2711_v31 }
 0x8f4   : > { %v2726_v22 = vpop.xlane.xlu1 %2725 }
 0x8f5   : > { %5043 = vrcp.f32 %v2726_v22 }
 0x8f8   : > { %v2723_v19 = vpop.xlane.xlu1 %2722 }
 0x8f9   : > { %5045 = vrcp.f32 %v2723_v19  ;;  %v5040_v21 = vpop.eup %5039 }
 0x8fa   : > { %v2720_v25 = vpop.xlane.xlu0 %2719  ;;  %v2736_v47 = vmul.f32 %v5040_v21, %v6001_v7 }
 0x8fb   : > { %v5042_v20 = vpop.eup %5041  ;;  %5047 = vrcp.f32 %v2720_v25 }
 0x8fc   : > { %v2734_v45 = vmul.f32 %v5042_v20, %v6005_v40 }
 0x8fe   : > { %v2717_v50 = vpop.xlane.xlu0 %2716  ;;  %4741 = vmatprep.mubr.msk.f32.mxu0 %vm1060_vm2, %v2734_v45  ;;  %v686_v45 = vld [vmem:[#allocation5 + $0xb8] sm:$0xff] }
 0x8ff   : > { %5049 = vrcp.f32 %v2717_v50  ;;  %4742 = vmatmul.mubr.msk.f32.vlgmr.msra.gmra.mxu0 %vm1060_vm2, %v2736_v47  ;;  %v2732_v41 = vpop.xlane.xlu1 %2731 }
 0x900   : > { %4752 = vmatpush3.msra.mxu0 %v2926_v28 }
 0x901   : > { %4753 = vmatprep.subr.mxu0 %v2924_v12 }
 0x902   : > { %4754 = vmatpush3.msra.mxu0 %v2924_v12  ;;  %v2729_v46 = vpop.xlane.xlu0 %2728  ;;  %v5044_v29 = vpop.eup %5043 }
 0x903   : > { %5051 = vrcp.f32 %v2729_v46  ;;  %4765 = vmatprep.subr.msk.mxu0 %vm701_vm1, %v3104_v6  ;;  %v2744_v36 = vmul.f32 %v5044_v29, %v6010_v43  ;;  %v3284_v13 = vpop.permute.xlu1 %3283  ;;  %v678_v46 = vld [vmem:[#allocation5 + $0x78] sm:$0xff] }
 0x904   : > { %5053 = vrcp.f32 %v2732_v41 }
 0x906   : > { %v5046_v40 = vpop.eup %5045  ;;  %v3191_v9 = vpop.permute.xlu0 %3190 }
 0x907   : > { %v2742_v7 = vmul.f32 %v5046_v40, %v6014_v44  ;;  %v677_v40 = vld [vmem:[#allocation5 + $0x70] sm:$0xff] }
 0x908   : > { %v5048_v1 = vpop.eup %5047 }
 0x909   : > { %4755 = vmatprep.mubr.msk.f32.mxu0 %vm1060_vm2, %v2742_v7  ;;  %v2740_v44 = vmul.f32 %v5048_v1, %v6018_v56 }
 0x90a   : > { %4756 = vmatmul.mubr.msk.f32.vlgmr.msra.gmra.mxu0 %vm1060_vm2, %v2744_v36  ;;  %v3377_v12 = vpop.permute.xlu0 %3376 }
 0x90b   : > { %4766 = vmatpush3.xpose.msk.msra.mxu0 %vm701_vm1, %v3104_v6  ;;  %4769 = vmatprep.mubr.msk.f32.mxu0 %vm701_vm1, %v3098_v37 }
 0x90c   : > { %v5050_v28 = vpop.eup %5049  ;;  %4767 = vmatprep.subr.msk.mxu0 %vm701_vm1, %v3102_v10 }
 0x90d   : > { %v2738_v27 = vmul.f32 %v5050_v28, %v6025_v17  ;;  %v3280_v17 = vpop.permute.xlu1 %3279 }
 0x90f   : > { %4768 = vmatpush3.xpose.msk.msra.mxu0 %vm701_vm1, %v3102_v10  ;;  %4748 = vmatprep.mubr.msk.f32.mxu1 %vm1060_vm2, %v2738_v27  ;;  %v685_v27 = vld [vmem:[#allocation5 + $0xb0] sm:$0xff] }
 0x910   : > { %v5052_v43 = vpop.eup %5051  ;;  %4779 = vmatprep.subr.msk.mxu0 %vm701_vm1, %v3286_v42  ;;  %4749 = vmatmul.mubr.msk.f32.vlgmr.msra.gmra.mxu1 %vm1060_vm2, %v2740_v44  ;;  %v694_v44 = vld [vmem:[#allocation5 + $0xf8] sm:$0xff] }
 0x911   : > { %v5054_v30 = vpop.eup %5053  ;;  %4759 = vmatpush3.msra.mxu1 %v6022_v60  ;;  %v2746_v35 = vmul.f32 %v5052_v43, %v6033_v32  ;;  %v3282_v60 = vpop.permute.xlu0 %3281 }
 0x912   : > { %4760 = vmatprep.subr.mxu1 %v3011_v14  ;;  %4770 = vmatmul.mubr.msk.f32.vlgmr.msra.gmra.mxu0 %vm701_vm1, %v3100_v16  ;;  %v2748_v56 = vmul.f32 %v5054_v30, %v6027_v23  ;;  %v3375_v32 = vpop.permute.xlu1 %3374  ;;  %v670_v16 = vld [vmem:[#allocation5 + $0x38] sm:$0xff] }
 0x913   : > { %4761 = vmatpush3.msra.mxu1 %v3011_v14  ;;  %4780 = vmatpush3.xpose.msk.msra.mxu0 %vm701_vm1, %v3286_v42  ;;  %v669_v42 = vld [vmem:[#allocation5 + $0x30] sm:$0xff] }
 0x914   : > { %4783 = vmatprep.mubr.msk.f32.mxu0 %vm701_vm1, %v3280_v17  ;;  %4762 = vmatprep.mubr.msk.f32.mxu1 %vm1060_vm2, %v2746_v35 }
 0x915   : > { %4772 = vmatprep.subr.msk.mxu1 %vm701_vm1, %v6053_v62  ;;  %4781 = vmatprep.subr.msk.mxu0 %vm701_vm1, %v3284_v13  ;;  %v3371_v23 = vpop.permute.xlu0 %3370 }
 0x916   : > { %4763 = vmatmul.mubr.msk.f32.vlgmr.msra.gmra.mxu1 %vm1060_vm2, %v2748_v56  ;;  %v3373_v6 = vpop.permute.xlu1 %3372 }
 0x917   : > { %4773 = vmatpush3.xpose.msk.msra.mxu1 %vm701_vm1, %v6053_v62  ;;  %4776 = vmatprep.mubr.msk.f32.mxu1 %vm701_vm1, %v6057_v24 }
 0x918   : > { %4774 = vmatprep.subr.msk.mxu1 %vm701_vm1, %v6055_v18  ;;  %4782 = vmatpush3.xpose.msk.msra.mxu0 %vm701_vm1, %v3284_v13 }
 0x91b   : > { %4775 = vmatpush3.xpose.msk.msra.mxu1 %vm701_vm1, %v6055_v18  ;;  %4784 = vmatmul.mubr.msk.f32.vlgmr.msra.gmra.mxu0 %vm701_vm1, %v3282_v60 }
 0x91c   : > { %4786 = vmatprep.subr.msk.mxu1 %vm701_vm1, %v3377_v12 }
 0x91e   : > { %4777 = vmatmul.mubr.msk.f32.vlgmr.msra.gmra.mxu1 %vm701_vm1, %v3191_v9 }
 0x91f   : > { %4787 = vmatpush3.xpose.msk.msra.mxu1 %vm701_vm1, %v3377_v12  ;;  %4790 = vmatprep.mubr.msk.f32.mxu1 %vm701_vm1, %v3371_v23  ;;  %v693_v12 = vld [vmem:[#allocation5 + $0xf0] sm:$0xff] }
 0x920   : > { %4788 = vmatprep.subr.msk.mxu1 %vm701_vm1, %v3375_v32 }
 0x923   : > { %4789 = vmatpush3.xpose.msk.msra.mxu1 %vm701_vm1, %v3375_v32 }
 0x926   : > { %4791 = vmatmul.mubr.msk.f32.vlgmr.msra.gmra.mxu1 %vm701_vm1, %v3373_v6 }
 0x9bf   : > { %v6105_v10 = vpop.f32.mrf.mxu0 }
 0x9c1   : > { %v6107_v14 = vpop.f32.mrf.mxu0 }
 0x9ca   : > { %v6109_v37 = vpop.f32.mrf.mxu0 }
 0x9cc   : > { %v6111_v62 = vpop.f32.mrf.mxu0 }
 0x9d0   : > { %v6113_v18 = vpop.f32.mrf.mxu1 }
 0x9d2   : > { %v4771_v24 = vpop.f32.mrf.mxu0  ;;  %v6115_v31 = vpop.f32.mrf.mxu1 }
 0x9d3   : > { %v3185_v34 = vadd.f32 %v4771_v24, %v670_v16 }
 0x9d4   : > { %v3179_v22 = vpop.f32.mrf.mxu0 }
 0x9d5   : > { %v3180_v19 = vadd.f32 %v3179_v22, %v669_v42  ;;  %v3464_v21 = vsel %vm1060_vm2, %v3185_v34, -inf }
 0x9d6   : > { %3465 = vmax.xlane.f32.xlu1 %v3464_v21  ;;  %v6119_v20 = vpop.f32.mrf.mxu1 }
 0x9d7   : > { %v3461_v25 = vsel %vm1060_vm2, %v3180_v19, -inf }
 0x9d8   : > { %3462 = vmax.xlane.f32.xlu0 %v3461_v25  ;;  %v6121_v50 = vpop.f32.mrf.mxu1 }
 0x9db   : > { %v4785_v47 = vpop.f32.mrf.mxu0 }
 0x9dc   : > { %v3367_v41 = vadd.f32 %v4785_v47, %v686_v45 }
 0x9dd   : > { %v3361_v13 = vpop.f32.mrf.mxu0 }
 0x9de   : > { %v4778_v29 = vpop.f32.mrf.mxu1  ;;  %v3476_v7 = vsel %vm1060_vm2, %v3367_v41, -inf  ;;  %v3362_v43 = vadd.f32 %v3361_v13, %v685_v27 }
 0x9df   : > { %v3276_v36 = vadd.f32 %v4778_v29, %v678_v46  ;;  %3477 = vmax.xlane.f32.xlu1 %v3476_v7 }
 0x9e0   : > { %v3270_v1 = vpop.f32.mrf.mxu1  ;;  %v3473_v23 = vsel %vm1060_vm2, %v3362_v43, -inf }
 0x9e1   : > { %v3271_v28 = vadd.f32 %v3270_v1, %v677_v40  ;;  %v3470_v9 = vsel %vm1060_vm2, %v3276_v36, -inf }
 0x9e2   : > { %3471 = vmax.xlane.f32.xlu0 %v3470_v9 }
 0x9e3   : > { %v3467_v30 = vsel %vm1060_vm2, %v3271_v28, -inf }
 0x9e6   : > { %3468 = vmax.xlane.f32.xlu0 %v3467_v30  ;;  %v4792_v35 = vpop.f32.mrf.mxu1 }
 0x9e7   : > { %v3458_v17 = vadd.f32 %v4792_v35, %v694_v44 }
 0x9e8   : > { %v3452_v56 = vpop.f32.mrf.mxu1 }
 0x9e9   : > { %v3453_v60 = vadd.f32 %v3452_v56, %v693_v12  ;;  %v3482_v32 = vsel %vm1060_vm2, %v3458_v17, -inf }
 0x9ea   : > { %3474 = vmax.xlane.f32.xlu0 %v3473_v23  ;;  %3483 = vmax.xlane.f32.xlu1 %v3482_v32 }
 0x9eb   : > { %v3479_v6 = vsel %vm1060_vm2, %v3453_v60, -inf }
 0x9ee   : > { %3480 = vmax.xlane.f32.xlu0 %v3479_v6 }
 0x9fb   : > { %3549 = vrot.lane.b32.xlu1 %v5574_v59, %s5283_s17 }
 0x9ff   : > { %3638 = vrot.lane.b32.xlu1 %v5581_v61, %s5283_s17 }
 0xa03   : > { %3636 = vrot.lane.b32.xlu1 %v5588_v2, %s5283_s17 }
 0xa04   : > { %3551 = vrot.lane.b32.xlu0 %v5572_v57, %s5283_s17 }
 0xa07   : > { %3723 = vrot.lane.b32.xlu1 %v5590_v3, %s5283_s17 }
 0xa08   : > { %3725 = vrot.lane.b32.xlu0 %v5585_v0, %s5283_s17 }
 0xa5f   : > { %v3466_v16 = vpop.xlane.xlu1 %3465 }
 0xa60   : > { %v3486_v24 = vsub.f32 %v3185_v34, %v3466_v16 }
 0xa61   : > { %v3463_v42 = vpop.xlane.xlu0 %3462 }
 0xa62   : > { %v3495_v22 = vmul.f32 1.442695, %v3486_v24  ;;  %v3485_v59 = vsub.f32 %v3180_v19, %v3463_v42 }
 0xa64   : > { %5055 = vpow2.f32 %v3495_v22  ;;  %v3493_v21 = vmul.f32 1.442695, %v3485_v59 }
 0xa66   : > { %5057 = vpow2.f32 %v3493_v21 }
 0xa68   : > { %v3478_v61 = vpop.xlane.xlu1 %3477 }
 0xa69   : > { %v3490_v25 = vsub.f32 %v3367_v41, %v3478_v61 }
 0xa6b   : > { %v3503_v2 = vmul.f32 1.442695, %v3490_v25  ;;  %v3472_v45 = vpop.xlane.xlu0 %3471 }
 0xa6c   : > { %v3488_v47 = vsub.f32 %v3276_v36, %v3472_v45 }
 0xa6d   : > { %5059 = vpow2.f32 %v3503_v2 }
 0xa6e   : > { %v3499_v57 = vmul.f32 1.442695, %v3488_v47 }
 0xa6f   : > { %v3469_v46 = vpop.xlane.xlu0 %3468 }
 0xa70   : > { %5061 = vpow2.f32 %v3499_v57  ;;  %v3487_v19 = vsub.f32 %v3271_v28, %v3469_v46 }
 0xa71   : > { %v6141_v3 = vpop.eup %5055 }
 0xa72   : > { %v3512_v0 = vsel %vm1060_vm2, %v6141_v3, 0.0  ;;  %v3497_v13 = vmul.f32 1.442695, %v3487_v19 }
 0xa73   : > { %v6145_v34 = vpop.eup %5057  ;;  %v3484_v29 = vpop.xlane.xlu1 %3483  ;;  %3513 = vadd.xlane.f32.xlu1 %v3512_v0 }
 0xa74   : > { %v3475_v40 = vpop.xlane.xlu0 %3474  ;;  %v3492_v7 = vsub.f32 %v3458_v17, %v3484_v29  ;;  %v3509_v36 = vsel %vm1060_vm2, %v6145_v34, 0.0 }
 0xa75   : > { %v3489_v41 = vsub.f32 %v3362_v43, %v3475_v40  ;;  %3510 = vadd.xlane.f32.xlu0 %v3509_v36  ;;  %v4021_v40 = vld [vmem:[#allocation8 + $0x18] sm:$0xff]  ;;  %v4018_v36 = vld [vmem:[#allocation8] sm:$0xff] }
 0xa76   : > { %v3507_v1 = vmul.f32 1.442695, %v3492_v7  ;;  %v4020_v7 = vld [vmem:[#allocation8 + $0x10] sm:$0xff] }
 0xa77   : > { %v3501_v9 = vmul.f32 1.442695, %v3489_v41  ;;  %v3550_v27 = vpop.permute.xlu1 %3549  ;;  %v4019_v41 = vld [vmem:[#allocation8 + $0x8] sm:$0xff] }
 0xa78   : > { %v3481_v44 = vpop.xlane.xlu0 %3480  ;;  %5063 = vpow2.f32 %v3507_v1 }
 0xa79   : > { %v3491_v30 = vsub.f32 %v3453_v60, %v3481_v44  ;;  %5065 = vpow2.f32 %v3501_v9 }
 0xa7a   : > { %v6149_v35 = vpop.eup %5059  ;;  %5067 = vpow2.f32 %v3497_v13 }
 0xa7b   : > { %v3505_v28 = vmul.f32 1.442695, %v3491_v30  ;;  %v3639_v12 = vpop.permute.xlu1 %3638  ;;  %v3524_v43 = vsel %vm1060_vm2, %v6149_v35, 0.0 }
 0xa7c   : > { %v3552_v56 = vpop.permute.xlu0 %3551  ;;  %4800 = vmatprep.subr.mxu1 %v3639_v12  ;;  %3525 = vadd.xlane.f32.xlu1 %v3524_v43 }
 0xa7d   : > { %4793 = vmatprep.subr.mxu0 %v3552_v56  ;;  %v6153_v17 = vpop.eup %5061  ;;  %4801 = vmatpush3.msra.mxu1 %v3639_v12  ;;  %5069 = vpow2.f32 %v3505_v28 }
 0xa7e   : > { %4794 = vmatpush3.msra.mxu0 %v3552_v56  ;;  %v3518_v32 = vsel %vm1060_vm2, %v6153_v17, 0.0 }
 0xa7f   : > { %4795 = vmatprep.subr.mxu0 %v3550_v27  ;;  %v3637_v60 = vpop.permute.xlu1 %3636 }
 0xa80   : > { %4796 = vmatpush3.msra.mxu0 %v3550_v27  ;;  %v3726_v23 = vpop.permute.xlu0 %3725  ;;  %4802 = vmatprep.subr.mxu1 %v3637_v60 }
 0xa81   : > { %4807 = vmatprep.subr.mxu0 %v3726_v23  ;;  %4803 = vmatpush3.msra.mxu1 %v3637_v60 }
 0xa82   : > { %3519 = vadd.xlane.f32.xlu1 %v3518_v32 }
 0xa85   : > { %v6157_v6 = vpop.eup %5063 }
 0xa86   : > { %v5066_v16 = vpop.eup %5065  ;;  %v3530_v24 = vsel %vm1060_vm2, %v6157_v6, 0.0 }
 0xa87   : > { %3531 = vadd.xlane.f32.xlu1 %v3530_v24  ;;  %v3521_v42 = vsel %vm1060_vm2, %v5066_v16, 0.0  ;;  %v5068_v22 = vpop.eup %5067 }
 0xa88   : > { %3522 = vadd.xlane.f32.xlu0 %v3521_v42  ;;  %v3515_v59 = vsel %vm1060_vm2, %v5068_v22, 0.0 }
 0xa8a   : > { %v6163_v21 = vpop.eup %5069 }
 0xa8b   : > { %v3527_v61 = vsel %vm1060_vm2, %v6163_v21, 0.0 }
 0xa8c   : > { %3516 = vadd.xlane.f32.xlu0 %v3515_v59 }
 0xa90   : > { %3528 = vadd.xlane.f32.xlu0 %v3527_v61 }
 0xa98   : > { %3810 = vrot.lane.b32.xlu1 %v5603_v8, %s5283_s17 }
 0xa9c   : > { %3907 = vrot.lane.b32.xlu1 %v5950_v54, %s5284_s16 }
 0xaa0   : > { %3939 = vrot.lane.b32.xlu1 %v6105_v10, %s5285_s15 }
 0xaa4   : > { %3911 = vrot.lane.b32.xlu1 %v5958_v63, %s5284_s16 }
 0xaa6   : > { %3812 = vrot.lane.b32.xlu0 %v5593_v5, %s5283_s17  ;;  %v3724_v5 = vpop.permute.xlu1 %3723  ;;  %s5197_s17 = sshll.u32 %s5287_s22, 4  ;;  %s5198_s17 = int_to_ptr.vmem [resolvable:$false] %s5197_s17 }
 0xaa7   : > { %p5200_p13 = scmp.lt.s32.totalorder %s6275_s14, %s5198_s17 }
 0xaa8   : > { %3943 = vrot.lane.b32.xlu1 %v6113_v18, %s5285_s15 }
 0xaaa   : > { %3905 = vrot.lane.b32.xlu0 %v5952_v39, %s5284_s16 }
 0xaac   : > { %3915 = vrot.lane.b32.xlu1 %v5954_v48, %s5284_s16 }
 0xaae   : > { %3937 = vrot.lane.b32.xlu0 %v6107_v14, %s5285_s15 }
 0xab0   : > { %3947 = vrot.lane.b32.xlu1 %v6109_v37, %s5285_s15 }
 0xab2   : > { %3909 = vrot.lane.b32.xlu0 %v5960_v15, %s5284_s16 }
 0xab4   : > { %3919 = vrot.lane.b32.xlu1 %v5964_v26, %s5284_s16 }
 0xab6   : > { %3941 = vrot.lane.b32.xlu0 %v6115_v31, %s5285_s15 }
 0xaba   : > { %3913 = vrot.lane.b32.xlu0 %v5956_v49, %s5284_s16 }
 0xabe   : > { %3945 = vrot.lane.b32.xlu0 %v6111_v62, %s5285_s15 }
 0xac2   : > { %3917 = vrot.lane.b32.xlu0 %v5966_v33, %s5284_s16 }
 0xafc   : > { %v3514_v8 = vpop.xlane.xlu1 %3513 }
 0xafd   : > { %5071 = vrcp.f32 %v3514_v8 }
 0xafe   : > { %v3511_v54 = vpop.xlane.xlu0 %3510 }
 0xaff   : > { %5073 = vrcp.f32 %v3511_v54 }
 0xb05   : > { %v3526_v63 = vpop.xlane.xlu1 %3525 }
 0xb06   : > { %5075 = vrcp.f32 %v3526_v63 }
 0xb0a   : > { %v5072_v39 = vpop.eup %5071 }
 0xb0b   : > { %v3536_v26 = vmul.f32 %v5072_v39, %v6141_v3  ;;  %v3520_v33 = vpop.xlane.xlu1 %3519 }
 0xb0c   : > { %v5074_v48 = vpop.eup %5073 }
 0xb0d   : > { %v3534_v15 = vmul.f32 %v5074_v48, %v6145_v34 }
 0xb0f   : > { %4797 = vmatprep.mubr.msk.f32.mxu0 %vm1060_vm2, %v3534_v15 }
 0xb10   : > { %4798 = vmatmul.mubr.msk.f32.vlgmr.msra.gmra.mxu0 %vm1060_vm2, %v3536_v26  ;;  %v3532_v14 = vpop.xlane.xlu1 %3531 }
 0xb11   : > { %v3523_v49 = vpop.xlane.xlu0 %3522  ;;  %4808 = vmatpush3.msra.mxu0 %v3726_v23 }
 0xb12   : > { %5077 = vrcp.f32 %v3523_v49  ;;  %4809 = vmatprep.subr.mxu0 %v3724_v5 }
 0xb13   : > { %4810 = vmatpush3.msra.mxu0 %v3724_v5  ;;  %5079 = vrcp.f32 %v3520_v33  ;;  %v5076_v18 = vpop.eup %5075 }
 0xb14   : > { %v3544_v2 = vmul.f32 %v5076_v18, %v6149_v35  ;;  %v3811_v34 = vpop.permute.xlu1 %3810  ;;  %4821 = vmatprep.subr.mxu0 %v4021_v40 }
 0xb15   : > { %v3517_v10 = vpop.xlane.xlu0 %3516 }
 0xb16   : > { %5081 = vrcp.f32 %v3517_v10 }
 0xb17   : > { %5083 = vrcp.f32 %v3532_v14 }
 0xb18   : > { %v3908_v12 = vpop.permute.xlu1 %3907 }
 0xb19   : > { %v3529_v37 = vpop.xlane.xlu0 %3528  ;;  %v3994_v61 = vsel %vm701_vm1, %v5795_v51, %v3908_v12 }
 0xb1a   : > { %5085 = vrcp.f32 %v3529_v37 }
 0xb1c   : > { %v3940_v43 = vpop.permute.xlu1 %3939 }
 0xb1d   : > { %v3813_v62 = vpop.permute.xlu0 %3812  ;;  %v4002_v54 = vsel %vm1060_vm2, %v3994_v61, %v3940_v43 }
 0xb1e   : > { %4814 = vmatprep.subr.mxu1 %v3813_v62 }
 0xb1f   : > { %v5078_v31 = vpop.eup %5077 }
 0xb20   : > { %v3542_v25 = vmul.f32 %v5078_v31, %v5066_v16  ;;  %v5080_v45 = vpop.eup %5079  ;;  %v3912_v60 = vpop.permute.xlu1 %3911 }
 0xb21   : > { %v3540_v46 = vmul.f32 %v5080_v45, %v6153_v17  ;;  %v3906_v56 = vpop.permute.xlu0 %3905  ;;  %v3996_v51 = vsel %vm701_vm1, %v5803_v55, %v3912_v60 }
 0xb22   : > { %4811 = vmatprep.mubr.msk.f32.mxu0 %vm1060_vm2, %v3542_v25 }
 0xb23   : > { %v5082_v47 = vpop.eup %5081  ;;  %4812 = vmatmul.mubr.msk.f32.vlgmr.msra.gmra.mxu0 %vm1060_vm2, %v3544_v2 }
 0xb24   : > { %v3538_v57 = vmul.f32 %v5082_v47, %v5068_v22  ;;  %v5084_v3 = vpop.eup %5083  ;;  %4822 = vmatpush3.msra.mxu0 %v4021_v40  ;;  %v3944_v32 = vpop.permute.xlu1 %3943 }
 0xb25   : > { %v3548_v29 = vmul.f32 %v5084_v3, %v6157_v6  ;;  %4823 = vmatprep.subr.mxu0 %v4020_v7  ;;  %v3938_v17 = vpop.permute.xlu0 %3937  ;;  %v4004_v10 = vsel %vm1060_vm2, %v3996_v51, %v3944_v32 }
 0xb26   : > { %4804 = vmatprep.mubr.msk.f32.mxu1 %vm1060_vm2, %v3538_v57  ;;  %4824 = vmatpush3.msra.mxu0 %v4020_v7 }
 0xb27   : > { %v5086_v0 = vpop.eup %5085  ;;  %4805 = vmatmul.mubr.msk.f32.vlgmr.msra.gmra.mxu1 %vm1060_vm2, %v3540_v46  ;;  %4825 = vmatprep.subr.mxu0 %v4019_v41 }
 0xb28   : > { %4815 = vmatpush3.msra.mxu1 %v3813_v62  ;;  %v3546_v19 = vmul.f32 %v5086_v0, %v6163_v21  ;;  %4826 = vmatpush3.msra.mxu0 %v4019_v41  ;;  %v3916_v16 = vpop.permute.xlu1 %3915 }
 0xb29   : > { %4816 = vmatprep.subr.mxu1 %v3811_v34  ;;  %4827 = vmatprep.subr.mxu0 %v4018_v36  ;;  %v3910_v23 = vpop.permute.xlu0 %3909  ;;  %v3998_v55 = vsel %vm701_vm1, %v5799_v52, %v3916_v16 }
 0xb2a   : > { %4817 = vmatpush3.msra.mxu1 %v3811_v34  ;;  %4818 = vmatprep.mubr.msk.f32.mxu1 %vm1060_vm2, %v3546_v19  ;;  %v3995_v26 = vsel %vm701_vm1, %v5805_v58, %v3910_v23 }
 0xb2b   : > { %4819 = vmatmul.mubr.msk.f32.vlgmr.msra.gmra.mxu1 %vm1060_vm2, %v3548_v29  ;;  %4828 = vmatpush3.msra.mxu0 %v4018_v36 }
 0xb2c   : > { %v3948_v42 = vpop.permute.xlu1 %3947 }
 0xb2d   : > { %v3942_v6 = vpop.permute.xlu0 %3941 }
 0xb2e   : > { %v4003_v49 = vsel %vm1060_vm2, %v3995_v26, %v3942_v6 }
 0xb31   : > { %v3914_v24 = vpop.permute.xlu0 %3913 }
 0xb32   : > { %v3997_v14 = vsel %vm701_vm1, %v5801_v53, %v3914_v24  ;;  %v4006_v53 = vsel %vm1060_vm2, %v3998_v55, %v3948_v42 }
 0xb35   : > { %v3946_v22 = vpop.permute.xlu0 %3945 }
 0xb36   : > { %v4005_v62 = vsel %vm1060_vm2, %v3997_v14, %v3946_v22 }
 0xb39   : > { %v3918_v59 = vpop.permute.xlu0 %3917 }
 0xb3a   : > { %v3999_v45 = vsel %vm701_vm1, %v5811_v11, %v3918_v59  ;;  %v4406_v11 = vld [vmem:[%s6327_s7] ss:$0 sm:$0xff] }
 0xbd0   : > { %v4799_v1 = vpop.f32.mrf.mxu0 }
 0xbd1   : > { %3971 = vrot.lane.b32.xlu1 %v4799_v1, %s5286_s19 }
 0xbd2   : > { %v3627_v9 = vpop.f32.mrf.mxu0 }
 0xbd3   : > { %3969 = vrot.lane.b32.xlu0 %v3627_v9, %s5286_s19 }
 0xbe3   : > { %v4813_v13 = vpop.f32.mrf.mxu0 }
 0xbe4   : > { %3979 = vrot.lane.b32.xlu1 %v4813_v13, %s5286_s19 }
 0xbe5   : > { %v3801_v27 = vpop.f32.mrf.mxu0 }
 0xbe6   : > { %3977 = vrot.lane.b32.xlu0 %v3801_v27, %s5286_s19 }
 0xbe7   : > { %v4806_v44 = vpop.f32.mrf.mxu1 }
 0xbe8   : > { %3975 = vrot.lane.b32.xlu1 %v4806_v44, %s5286_s19 }
 0xbe9   : > { %v3714_v30 = vpop.f32.mrf.mxu1 }
 0xbea   : > { %3973 = vrot.lane.b32.xlu0 %v3714_v30, %s5286_s19 }
 0xbeb   : > { %v4820_v35 = vpop.f32.mrf.mxu1 }
 0xbec   : > { %3951 = vrot.lane.b32.xlu1 %v6119_v20, %s5285_s15  ;;  %v3920_v20 = vpop.permute.xlu1 %3919 }
 0xbed   : > { %v3888_v28 = vpop.f32.mrf.mxu1  ;;  %v4000_v57 = vsel %vm701_vm1, %v5809_v4, %v3920_v20 }
 0xbee   : > { %3949 = vrot.lane.b32.xlu0 %v6121_v50, %s5285_s15  ;;  %v3993_v50 = vsel %vm701_vm1, %v5797_v38, %v3906_v56  ;;  %s5199_s15 = scalar_lea.vmem %s5198_s17, 2048 }
 0xbef   : > { %v4001_v5 = vsel %vm1060_vm2, %v3993_v50, %v3938_v17  ;;  %p5201_p0 = scmp.lt.s32.totalorder %s5199_s15, %s5193_s13 }
 0xbf0   : > { %3983 = vrot.lane.b32.xlu1 %v4820_v35, %s5286_s19 }
 0xbf1   : > { %p5202_p2 = por %p5201_p0, %p5200_p13 }
 0xbf2   : > { %3981 = vrot.lane.b32.xlu0 %v3888_v28, %s5286_s19 }
 0xbf3   : > { %p5203_p10 = pnand %p5202_p2, %p5196_p9 }
 0xc43   : > { %v3972_v21 = vpop.permute.xlu1 %3971 }
 0xc44   : > { %v4011_v48 = vsel %vm4009_vm3, %v4002_v54, %v3972_v21 }
 0xc45   : > { %v3970_v8 = vpop.permute.xlu0 %3969 }
 0xc46   : > { %v4010_v39 = vsel %vm4009_vm3, %v4001_v5, %v3970_v8 }
 0xc47   : > { %4829 = vmatprep.mubr.msk.f32.mxu0 %vm379_vm0, %v4010_v39 }
 0xc48   : > { %4830 = vmatmul.mubr.msk.f32.vlgmr.msra.gmra.mxu0 %vm379_vm0, %v4011_v48 }
 0xc56   : > { %v3980_v63 = vpop.permute.xlu1 %3979 }
 0xc57   : > { %v4015_v2 = vsel %vm4009_vm3, %v4006_v53, %v3980_v63 }
 0xc58   : > { %v3978_v38 = vpop.permute.xlu0 %3977 }
 0xc59   : > { %v4014_v58 = vsel %vm4009_vm3, %v4005_v62, %v3978_v38 }
 0xc5a   : > { %v3976_v15 = vpop.permute.xlu1 %3975 }
 0xc5b   : > { %v4013_v18 = vsel %vm4009_vm3, %v4004_v10, %v3976_v15 }
 0xc5c   : > { %v3974_v33 = vpop.permute.xlu0 %3973 }
 0xc5d   : > { %v4012_v37 = vsel %vm4009_vm3, %v4003_v49, %v3974_v33 }
 0xc5e   : > { %v3952_v31 = vpop.permute.xlu1 %3951  ;;  %4832 = vmatprep.mubr.msk.f32.mxu0 %vm379_vm0, %v4012_v37 }
 0xc5f   : > { %4833 = vmatmul.mubr.msk.f32.gmra.mxu0 %vm379_vm0, %v4013_v18  ;;  %v4008_v3 = vsel %vm1060_vm2, %v4000_v57, %v3952_v31 }
 0xc60   : > { %4835 = vmatprep.mubr.msk.f32.mxu0 %vm379_vm0, %v4014_v58  ;;  %v3950_v25 = vpop.permute.xlu0 %3949 }
 0xc61   : > { %v4007_v46 = vsel %vm1060_vm2, %v3999_v45, %v3950_v25 }
 0xc62   : > { %v3984_v47 = vpop.permute.xlu1 %3983 }
 0xc63   : > { %4836 = vmatmul.mubr.msk.f32.gmra.mxu0 %vm379_vm0, %v4015_v2  ;;  %v4017_v34 = vsel %vm4009_vm3, %v4008_v3, %v3984_v47 }
 0xc64   : > { %v3982_v52 = vpop.permute.xlu0 %3981 }
 0xc65   : > { %v4016_v0 = vsel %vm4009_vm3, %v4007_v46, %v3982_v52 }
 0xc66   : > { %4838 = vmatprep.mubr.msk.f32.mxu0 %vm379_vm0, %v4016_v0 }
 0xc67   : > { %4839 = vmatmul.mubr.msk.f32.gmra.mxu0 %vm379_vm0, %v4017_v34 }
 0xd08   : > { %v4831_v19 = vpop.f32.mrf.mxu0 }
 0xd09   : > { %v4125_v29 = vadd.f32 %v4831_v19, %v4406_v11 }
 0xd0a   : > { %v4119_v4 = vpop.f32.mrf.mxu0 }
 0xd0b   : > { %4159 = vst.msk [vmem:[%s368_s23 + $0x8] sm:$0xff] %vm379_vm0, %v4125_v29  ;;  %v4120_v40 = vadd.f32 %v4406_v11, %v4119_v4 }
 0xd0d   : > { %4158 = vst.msk [vmem:[%s368_s23] sm:$0xff] %vm379_vm0, %v4120_v40 }
 0xd1f   : > { %v4834_v7 = vpop.f32.mrf.mxu0 }
 0xd20   : > { %v4135_v41 = vadd.f32 %v4834_v7, %v4406_v11 }
 0xd21   : > { %v4129_v36 = vpop.f32.mrf.mxu0 }
 0xd22   : > { %4161 = vst.msk [vmem:[%s368_s23 + $0x18] sm:$0xff] %vm379_vm0, %v4135_v41  ;;  %v4130_v1 = vadd.f32 %v4406_v11, %v4129_v36 }
 0xd23   : > { %v4837_v9 = vpop.f32.mrf.mxu0 }
 0xd24   : > { %4160 = vst.msk [vmem:[%s368_s23 + $0x10] sm:$0xff] %vm379_vm0, %v4130_v1  ;;  %v4145_v13 = vadd.f32 %v4837_v9, %v4406_v11 }
 0xd25   : > { %v4139_v27 = vpop.f32.mrf.mxu0 }
 0xd26   : > { %4163 = vst.msk [vmem:[%s368_s23 + $0x28] sm:$0xff] %vm379_vm0, %v4145_v13  ;;  %v4140_v44 = vadd.f32 %v4406_v11, %v4139_v27 }
 0xd27   : > { %v4840_v30 = vpop.f32.mrf.mxu0 }
 0xd28   : > { %4162 = vst.msk [vmem:[%s368_s23 + $0x20] sm:$0xff] %vm379_vm0, %v4140_v44  ;;  %v4155_v35 = vadd.f32 %v4840_v30, %v4406_v11 }
 0xd29   : > { %v4149_v28 = vpop.f32.mrf.mxu0 }
 0xd2a   : > { %4165 = vst.msk [vmem:[%s368_s23 + $0x38] sm:$0xff] %vm379_vm0, %v4155_v35  ;;  %v4150_v12 = vadd.f32 %v4406_v11, %v4149_v28 }
 0xd2c   : > { %4164 = vst.msk [vmem:[%s368_s23 + $0x30] sm:$0xff] %vm379_vm0, %v4150_v12 }
 0xd2d   : > { %5206 = shalt.err (!%p5203_p10)
}
 0xd2e   : > { %s5207_s19 = scalar_lea.hbm %s6272_s11, 1024  ;;  %s5211_s23 = scalar_lea.hbm %s6328_s8, 2048 }
 0xd2f   : > { %p5208_p6 = scmp.ne.s32.totalorder %s6272_s11, %s5207_s19  ;;  %p5212_p3 = scmp.lt.s32.totalorder %s6272_s11, %s6328_s8 }
 0xd30   : > { %p5213_p11 = scmp.lt.s32.totalorder %s5211_s23, %s5207_s19 }
 0xd31   : > { %p5209_p4 = pnand %p5208_p6, %p6353_p1 }
 0xd32   : > { %p5214_p5 = por %p5213_p11, %p5212_p3 }
 0xd33   : > { %p5210_p8 = pneg %p5209_p4 }
 0xd35   : > { %p5215_p7 = pnand %p5214_p5, %p5210_p8 }
 0xd37   : > { %5218 = shalt.err (!%p5215_p7)
}
 0xd38   : > { %s5288_s21 = smov 128  }
 0xd39   : > { %4863 = dma.vmem_to_hbm [thread:$0]  (%p6353_p1), %s6275_s14, 1024, %s6272_s11, %s4167_s9, %s5288_s21, %s5288_s21, %s5284_s16  }
 0xd3a PF: > { %s4196_s13 = sand.u32 1, %s5253_s27   ;;  %p6354_p12 = scmp.ne.s32.totalorder %s6338_s12, 0 }
 0xd3b   : > { %p6355_p9 = scmp.ge.s32.totalorder %s5265_s30, 2  ;;  %s4197_s22 = scalar_lea.sflag [#allocation4], %s4196_s13 }
 0xd3d   : > { %p4880_p13 = pnand %p6355_p9, %p6354_p12 }
 0xd3f   : > { %p4881_p0 = pneg %p4880_p13 }
 0xd41   : > { %5248 = dma.done.wait (%p4881_p0), %s4197_s22, 1024  }
 0xd42   : > { %5250 = vsyncadd (%p4881_p0), %s4197_s22, 4294966272  ;;  %p23_p2 = scmp.ge.s32.totalorder %s5423_s18, 4   ;;  %s6356_s27 = smov %s5257_s28 }
 0xd43   : > { %s6357_s28 = smov %s5261_s29  ;;  %s6358_s29 = smov %s5433_s24 }
 0xd44   : > { %s6359_s30 = smov %s5423_s18  ;;  %25 = sbr.rel (!%p23_p2) target bundleno = 10 (0xa), region = 109 }
 0xd49   :  { %4202 = vsyncpa [#allocation3], 1 }
 0xd4a   :  { %4204 = vsyncpa [#allocation3 + $0x1], 1 }
 0xd4b   :  { %4205 = vsyncpa [#allocation6], 1 }
 0xd4c   :  { %4206 = vsyncpa [#allocation9], 1 }
 0xd4d   :  { %4207 = vsyncpa [#allocation4], 1 }
 0xd4e   :  { %4209 = vsyncpa [#allocation4 + $0x1], 1 }

</bundles_post_ra>
